<compile_context>
chip_gen: v7x
topology: tpu7x:2x2x1
jax: 0.10.0
libtpu: 0.0.40
codegen_flags: <defaults>
</compile_context>

<pallas_src>
import functools

import jax
import jax.numpy as jnp
from jax.experimental import pallas as pl
from jax.experimental.pallas import tpu as pltpu


def _decoder_layer_kernel(
    x_ref, mask_ref,
    ln1w_ref, ln1b_ref,
    wq_ref, bq_ref, wk_ref, bk_ref, wv_ref, bv_ref, wo_ref, bo_ref,
    ln2w_ref, ln2b_ref,
    w1_ref, b1_ref, w2_ref, b2_ref,
    out_ref,
    *, batch_block, seq_len, num_heads, head_dim, eps,
):
    Bt, T, H, D = batch_block, seq_len, num_heads, head_dim
    E = H * D
    neg_min = jnp.finfo(jnp.float32).min
    bf16 = jnp.bfloat16

    x = x_ref[...].reshape(Bt * T, E)          # (M, E) f32, M = Bt*T
    mask = mask_ref[...]                        # (Bt, T, T) f32 additive mask

    def layernorm(h, w, b):
        mu = jnp.mean(h, axis=-1, keepdims=True)
        var = jnp.mean((h - mu) * (h - mu), axis=-1, keepdims=True)
        return (h - mu) * jax.lax.rsqrt(var + eps) * w + b

    # ---- self-attention block (do_layer_norm_before=True) ----
    h = layernorm(x, ln1w_ref[...], ln1b_ref[...]).astype(bf16)

    # 1/sqrt(head_dim) already folded into wq / bq on host.
    q = jnp.dot(h, wq_ref[...], preferred_element_type=jnp.float32) + bq_ref[...]
    k = jnp.dot(h, wk_ref[...], preferred_element_type=jnp.float32) + bk_ref[...]
    v = jnp.dot(h, wv_ref[...], preferred_element_type=jnp.float32) + bv_ref[...]

    wo_heads = wo_ref[...]                      # (H, D, E) bf16

    attn_rows = []
    for b in range(Bt):                         # small static loop over batch rows in block
        rs = slice(b * T, (b + 1) * T)

        def split_heads(m):
            # (T, E) -> (H, T, D), heads as a leading batch dim for batched MXU matmuls
            return jnp.stack(
                [m[rs, hd * D:(hd + 1) * D] for hd in range(H)], axis=0
            ).astype(bf16)

        qh = split_heads(q)                     # (H, T, D)
        kh = split_heads(k)
        vh = split_heads(v)

        s = jnp.einsum("hqd,hkd->hqk", qh, kh,
                       preferred_element_type=jnp.float32)          # (H, T, T) f32
        s = jnp.maximum(s + mask[b], neg_min)                        # mask add + clamp
        p = jax.nn.softmax(s, axis=-1)                               # f32 softmax

        o = jnp.einsum("hqk,hkd->hqd", p.astype(bf16), vh,
                       preferred_element_type=jnp.float32)           # (H, T, D)

        # out_proj as head-batched matmul; summing over heads == concat(heads) @ wo
        ob = jnp.einsum("hqd,hde->hqe", o.astype(bf16), wo_heads,
                        preferred_element_type=jnp.float32)          # (H, T, E)
        attn_rows.append(jnp.sum(ob, axis=0))                        # (T, E)

    attn = jnp.concatenate(attn_rows, axis=0) + bo_ref[...]          # (M, E)

    h1 = x + attn                               # residual (dropout p=0.0 -> identity)

    # ---- feed-forward block ----
    h2 = layernorm(h1, ln2w_ref[...], ln2b_ref[...]).astype(bf16)
    f = jnp.dot(h2, w1_ref[...], preferred_element_type=jnp.float32) + b1_ref[...]
    f = jnp.maximum(f, 0.0)                                          # ReLU
    f = jnp.dot(f.astype(bf16), w2_ref[...],
                preferred_element_type=jnp.float32) + b2_ref[...]

    out_ref[...] = (h1 + f).reshape(Bt, T, E)


def _choose_batch_block(B, T, target_rows=256):
    cap = max(1, target_rows // max(T, 1))
    for bt in range(min(B, cap), 0, -1):
        if B % bt == 0:
            return bt
    return 1


def _vmem_limit_bytes(Bt, T, E, F, H):
    D = E // H
    m = Bt * T
    weights = 2 * (3 * E * E + H * D * E + 2 * E * F)      # bf16 weight blocks
    vectors = 4 * (8 * E + F)                              # f32 biases + LN params
    streamed = 4 * (Bt * T * E + Bt * T * T)               # x + mask block
    work = 4 * (10 * m * E + 2 * m * F + H * T * T * 3 + H * T * D * 4)
    est = 2 * (weights + vectors + streamed) + work + (4 << 20)
    return int(min(max(est, 32 << 20), 64 << 20))          # <=64 MiB so valid on v7x


def quant_opt_decoder_layer(x, attention_mask, params, *, num_heads,
                            eps=1e-5, batch_block=None):
    """Forward pass of QuantOPTDecoderLayer (quant disabled, do_layer_norm_before=True).

    x: (B, T, E) float32; attention_mask: (B, 1, T, T) additive float mask.
    Linear weights in params are (in_features, out_features): y = x @ W + b.
    """
    B, T, E = x.shape
    assert E % num_heads == 0
    D = E // num_heads
    F = params["w1"].shape[1]
    Bt = _choose_batch_block(B, T) if batch_block is None else batch_block
    assert B % Bt == 0

    scaling = float(D) ** (-0.5)
    bf16 = jnp.bfloat16

    def vec2d(v):
        return v.astype(jnp.float32).reshape(1, -1)

    x = x.astype(jnp.float32)
    mask3 = attention_mask.astype(jnp.float32).reshape(B, T, T)

    # host-side param prep: fold scaling into q projection, cast weights to bf16,
    # reshape out_proj to head-major (H, D, E) for the head-batched out projection.
    wq = (params["wq"] * scaling).astype(bf16)
    bq = vec2d(params["bq"] * scaling)
    wk = params["wk"].astype(bf16)
    wv = params["wv"].astype(bf16)
    wo_h = params["wo"].astype(bf16).reshape(num_heads, D, E)
    w1 = params["w1"].astype(bf16)
    w2 = params["w2"].astype(bf16)

    kernel = functools.partial(
        _decoder_layer_kernel,
        batch_block=Bt, seq_len=T, num_heads=num_heads, head_dim=D, eps=eps,
    )

    def full(shape):
        return pl.BlockSpec(shape, lambda i, _n=len(shape): (0,) * _n)

    in_specs = [
        pl.BlockSpec((Bt, T, E), lambda i: (i, 0, 0)),   # x
        pl.BlockSpec((Bt, T, T), lambda i: (i, 0, 0)),   # additive mask
        full((1, E)), full((1, E)),                      # ln1 w, b
        full((E, E)), full((1, E)),                      # q proj (scaled)
        full((E, E)), full((1, E)),                      # k proj
        full((E, E)), full((1, E)),                      # v proj
        full((num_heads, D, E)), full((1, E)),           # out proj (head-major), bias
        full((1, E)), full((1, E)),                      # ln2 w, b
        full((E, F)), full((1, F)),                      # fc1
        full((F, E)), full((1, E)),                      # fc2
    ]

    fn = pl.pallas_call(
        kernel,
        out_shape=jax.ShapeDtypeStruct((B, T, E), jnp.float32),
        grid_spec=pltpu.PrefetchScalarGridSpec(
            num_scalar_prefetch=0,
            grid=(B // Bt,),
            in_specs=in_specs,
            out_specs=pl.BlockSpec((Bt, T, E), lambda i: (i, 0, 0)),
        ),
        compiler_params=pltpu.CompilerParams(
            dimension_semantics=("parallel",),
            vmem_limit_bytes=_vmem_limit_bytes(Bt, T, E, F, num_heads),
        ),
    )

    return fn(
        x, mask3,
        vec2d(params["ln1_w"]), vec2d(params["ln1_b"]),
        wq, bq,
        wk, vec2d(params["bk"]),
        wv, vec2d(params["bv"]),
        wo_h, vec2d(params["bo"]),
        vec2d(params["ln2_w"]), vec2d(params["ln2_b"]),
        w1, vec2d(params["b1"]),
        w2, vec2d(params["b2"]),
    )


def _reference(x, mask, p, num_heads, eps=1e-5):
    """Pure-JAX f32 reference mirroring the PyTorch forward (quant disabled)."""
    B, T, E = x.shape
    D = E // num_heads
    scaling = D ** (-0.5)

    def ln(h, w, b):
        mu = jnp.mean(h, -1, keepdims=True)
        var = jnp.mean((h - mu) ** 2, -1, keepdims=True)
        return (h - mu) / jnp.sqrt(var + eps) * w + b

    residual = x
    h = ln(x, p["ln1_w"], p["ln1_b"])
    q = (h @ p["wq"] + p["bq"]) * scaling
    k = h @ p["wk"] + p["bk"]
    v = h @ p["wv"] + p["bv"]
    q = q.reshape(B, T, num_heads, D).transpose(0, 2, 1, 3)
    k = k.reshape(B, T, num_heads, D).transpose(0, 2, 1, 3)
    v = v.reshape(B, T, num_heads, D).transpose(0, 2, 1, 3)
    s = jnp.einsum("bhtd,bhsd->bhts", q, k) + mask
    s = jnp.maximum(s, jnp.finfo(jnp.float32).min)
    a = jax.nn.softmax(s, axis=-1)
    o = jnp.einsum("bhts,bhsd->bhtd", a, v)
    o = o.transpose(0, 2, 1, 3).reshape(B, T, E)
    o = o @ p["wo"] + p["bo"]
    h1 = residual + o
    res2 = h1
    h2 = ln(h1, p["ln2_w"], p["ln2_b"])
    h2 = jnp.maximum(h2 @ p["w1"] + p["b1"], 0.0)
    h2 = h2 @ p["w2"] + p["b2"]
    return res2 + h2


if __name__ == "__main__":
    B, T, E = 2, 8, 32
    NUM_HEADS = 4
    FFN = 4 * E  # 128

    key = jax.random.PRNGKey(0)
    ks = jax.random.split(key, 20)

    def w(k, shape, scale=0.02):
        return (scale * jax.random.normal(k, shape)).astype(jnp.float32)

    params = {
        "ln1_w": jnp.ones((E,), jnp.float32),
        "ln1_b": w(ks[0], (E,)),
        "wq": w(ks[1], (E, E)), "bq": w(ks[2], (E,)),
        "wk": w(ks[3], (E, E)), "bk": w(ks[4], (E,)),
        "wv": w(ks[5], (E, E)), "bv": w(ks[6], (E,)),
        "wo": w(ks[7], (E, E)), "bo": w(ks[8], (E,)),
        "ln2_w": jnp.ones((E,), jnp.float32),
        "ln2_b": w(ks[9], (E,)),
        "w1": w(ks[10], (E, FFN)), "b1": w(ks[11], (FFN,)),
        "w2": w(ks[12], (FFN, E)), "b2": w(ks[13], (E,)),
    }

    x = jax.random.normal(ks[14], (B, T, E), jnp.float32)
    # causal additive attention mask, shape (B, 1, T, T)
    causal = jnp.where(
        jnp.tril(jnp.ones((T, T), jnp.bool_)), 0.0, -1e9
    ).astype(jnp.float32)
    attention_mask = jnp.broadcast_to(causal, (B, 1, T, T))

    out = quant_opt_decoder_layer(x, attention_mask, params, num_heads=NUM_HEADS)
    out = jax.block_until_ready(out)

    ref = _reference(x, attention_mask, params, NUM_HEADS)
    assert out.shape == (B, T, E)
    # bf16 matmul operands with f32 accumulation -> loosened tolerance vs f32 reference
    assert jnp.allclose(out, ref, rtol=2e-2, atol=2e-2), (
        float(jnp.max(jnp.abs(out - ref)))
    )
    print("KERNEL_OK")
</pallas_src>

<mosaic_0001>
module attributes {stable_mosaic.version = 11 : i64} {
  func.func @_decoder_layer_kernel(%arg0: i32, %arg1: memref<2x8x32xf32, #tpu.memory_space<vmem>>, %arg2: memref<2x8x8xf32, #tpu.memory_space<vmem>>, %arg3: memref<1x32xf32, #tpu.memory_space<vmem>>, %arg4: memref<1x32xf32, #tpu.memory_space<vmem>>, %arg5: memref<32x32xbf16, #tpu.memory_space<vmem>>, %arg6: memref<1x32xf32, #tpu.memory_space<vmem>>, %arg7: memref<32x32xbf16, #tpu.memory_space<vmem>>, %arg8: memref<1x32xf32, #tpu.memory_space<vmem>>, %arg9: memref<32x32xbf16, #tpu.memory_space<vmem>>, %arg10: memref<1x32xf32, #tpu.memory_space<vmem>>, %arg11: memref<4x8x32xbf16, #tpu.memory_space<vmem>>, %arg12: memref<1x32xf32, #tpu.memory_space<vmem>>, %arg13: memref<1x32xf32, #tpu.memory_space<vmem>>, %arg14: memref<1x32xf32, #tpu.memory_space<vmem>>, %arg15: memref<32x128xbf16, #tpu.memory_space<vmem>>, %arg16: memref<1x128xf32, #tpu.memory_space<vmem>>, %arg17: memref<128x32xbf16, #tpu.memory_space<vmem>>, %arg18: memref<1x32xf32, #tpu.memory_space<vmem>>, %arg19: memref<2x8x32xf32, #tpu.memory_space<vmem>>) attributes {dimension_semantics = [#tpu.dimension_semantics<parallel>], iteration_bounds = array<i64: 1>, scalar_prefetch = 0 : i64, scratch_operands = 0 : i64, tpu.core_type = #tpu.core_type<tc>, window_params = [{transform_indices = @transform_0, window_bounds = array<i64: 2, 8, 32>}, {transform_indices = @transform_1, window_bounds = array<i64: 2, 8, 8>}, {pipeline_mode = #tpu.pipeline_mode<synchronous>, transform_indices = @transform_2, window_bounds = array<i64: 1, 32>}, {pipeline_mode = #tpu.pipeline_mode<synchronous>, transform_indices = @transform_3, window_bounds = array<i64: 1, 32>}, {pipeline_mode = #tpu.pipeline_mode<synchronous>, transform_indices = @transform_4, window_bounds = array<i64: 32, 32>}, {pipeline_mode = #tpu.pipeline_mode<synchronous>, transform_indices = @transform_5, window_bounds = array<i64: 1, 32>}, {pipeline_mode = #tpu.pipeline_mode<synchronous>, transform_indices = @transform_6, window_bounds = array<i64: 32, 32>}, {pipeline_mode = #tpu.pipeline_mode<synchronous>, transform_indices = @transform_7, window_bounds = array<i64: 1, 32>}, {pipeline_mode = #tpu.pipeline_mode<synchronous>, transform_indices = @transform_8, window_bounds = array<i64: 32, 32>}, {pipeline_mode = #tpu.pipeline_mode<synchronous>, transform_indices = @transform_9, window_bounds = array<i64: 1, 32>}, {pipeline_mode = #tpu.pipeline_mode<synchronous>, transform_indices = @transform_10, window_bounds = array<i64: 4, 8, 32>}, {pipeline_mode = #tpu.pipeline_mode<synchronous>, transform_indices = @transform_11, window_bounds = array<i64: 1, 32>}, {pipeline_mode = #tpu.pipeline_mode<synchronous>, transform_indices = @transform_12, window_bounds = array<i64: 1, 32>}, {pipeline_mode = #tpu.pipeline_mode<synchronous>, transform_indices = @transform_13, window_bounds = array<i64: 1, 32>}, {pipeline_mode = #tpu.pipeline_mode<synchronous>, transform_indices = @transform_14, window_bounds = array<i64: 32, 128>}, {pipeline_mode = #tpu.pipeline_mode<synchronous>, transform_indices = @transform_15, window_bounds = array<i64: 1, 128>}, {pipeline_mode = #tpu.pipeline_mode<synchronous>, transform_indices = @transform_16, window_bounds = array<i64: 128, 32>}, {pipeline_mode = #tpu.pipeline_mode<synchronous>, transform_indices = @transform_17, window_bounds = array<i64: 1, 32>}, {transform_indices = @transform_18, window_bounds = array<i64: 2, 8, 32>}]} {
    %c0 = arith.constant 0 : index
    %c0_0 = arith.constant 0 : index
    %c0_1 = arith.constant 0 : index
    %0 = vector.load %arg1[%c0, %c0_0, %c0_1] : memref<2x8x32xf32, #tpu.memory_space<vmem>>, vector<2x8x32xf32>
    %1 = vector.shape_cast %0 : vector<2x8x32xf32> to vector<16x32xf32>
    %c0_2 = arith.constant 0 : index
    %c0_3 = arith.constant 0 : index
    %c0_4 = arith.constant 0 : index
    %2 = vector.load %arg2[%c0_2, %c0_3, %c0_4] : memref<2x8x8xf32, #tpu.memory_space<vmem>>, vector<2x8x8xf32>
    %c0_5 = arith.constant 0 : index
    %c0_6 = arith.constant 0 : index
    %3 = vector.load %arg3[%c0_5, %c0_6] : memref<1x32xf32, #tpu.memory_space<vmem>>, vector<1x32xf32>
    %c0_7 = arith.constant 0 : index
    %c0_8 = arith.constant 0 : index
    %4 = vector.load %arg4[%c0_7, %c0_8] : memref<1x32xf32, #tpu.memory_space<vmem>>, vector<1x32xf32>
    %cst = arith.constant dense<0.000000e+00> : vector<16xf32>
    %5 = vector.multi_reduction <add>, %1, %cst [1] : vector<16x32xf32> to vector<16xf32>
    %6 = vector.shape_cast %5 : vector<16xf32> to vector<16x1xf32>
    %cst_9 = arith.constant 3.200000e+01 : f32
    %7 = vector.broadcast %cst_9 : f32 to vector<16x1xf32>
    %8 = arith.divf %6, %7 : vector<16x1xf32>
    %9 = vector.broadcast %8 : vector<16x1xf32> to vector<16x32xf32>
    %10 = arith.subf %1, %9 : vector<16x32xf32>
    %11 = vector.broadcast %8 : vector<16x1xf32> to vector<16x32xf32>
    %12 = arith.subf %1, %11 : vector<16x32xf32>
    %13 = arith.mulf %10, %12 : vector<16x32xf32>
    %cst_10 = arith.constant dense<0.000000e+00> : vector<16xf32>
    %14 = vector.multi_reduction <add>, %13, %cst_10 [1] : vector<16x32xf32> to vector<16xf32>
    %15 = vector.shape_cast %14 : vector<16xf32> to vector<16x1xf32>
    %cst_11 = arith.constant 3.200000e+01 : f32
    %16 = vector.broadcast %cst_11 : f32 to vector<16x1xf32>
    %17 = arith.divf %15, %16 : vector<16x1xf32>
    %18 = vector.broadcast %8 : vector<16x1xf32> to vector<16x32xf32>
    %19 = arith.subf %1, %18 : vector<16x32xf32>
    %cst_12 = arith.constant 9.99999974E-6 : f32
    %20 = vector.broadcast %cst_12 : f32 to vector<16x1xf32>
    %21 = arith.addf %17, %20 : vector<16x1xf32>
    %22 = math.rsqrt %21 : vector<16x1xf32>
    %23 = vector.broadcast %22 : vector<16x1xf32> to vector<16x32xf32>
    %24 = arith.mulf %19, %23 : vector<16x32xf32>
    %25 = vector.broadcast %3 : vector<1x32xf32> to vector<16x32xf32>
    %26 = arith.mulf %24, %25 : vector<16x32xf32>
    %27 = vector.broadcast %4 : vector<1x32xf32> to vector<16x32xf32>
    %28 = arith.addf %26, %27 : vector<16x32xf32>
    %29 = arith.truncf %28 : vector<16x32xf32> to vector<16x32xbf16>
    %c0_13 = arith.constant 0 : index
    %c0_14 = arith.constant 0 : index
    %30 = vector.load %arg5[%c0_13, %c0_14] : memref<32x32xbf16, #tpu.memory_space<vmem>>, vector<32x32xbf16>
    %cst_15 = arith.constant dense<0.000000e+00> : vector<16x32xf32>
    %31 = tpu.matmul %29, %30, %cst_15 {dimension_numbers = #tpu.dot_dimension_numbers<[1], [0], [0], [1], [0, 0, 1, 1], [], []>} : vector<16x32xbf16>, vector<32x32xbf16>, vector<16x32xf32> -> vector<16x32xf32>
    %c0_16 = arith.constant 0 : index
    %c0_17 = arith.constant 0 : index
    %32 = vector.load %arg6[%c0_16, %c0_17] : memref<1x32xf32, #tpu.memory_space<vmem>>, vector<1x32xf32>
    %33 = vector.broadcast %32 : vector<1x32xf32> to vector<16x32xf32>
    %34 = arith.addf %31, %33 : vector<16x32xf32>
    %c0_18 = arith.constant 0 : index
    %c0_19 = arith.constant 0 : index
    %35 = vector.load %arg7[%c0_18, %c0_19] : memref<32x32xbf16, #tpu.memory_space<vmem>>, vector<32x32xbf16>
    %cst_20 = arith.constant dense<0.000000e+00> : vector<16x32xf32>
    %36 = tpu.matmul %29, %35, %cst_20 {dimension_numbers = #tpu.dot_dimension_numbers<[1], [0], [0], [1], [0, 0, 1, 1], [], []>} : vector<16x32xbf16>, vector<32x32xbf16>, vector<16x32xf32> -> vector<16x32xf32>
    %c0_21 = arith.constant 0 : index
    %c0_22 = arith.constant 0 : index
    %37 = vector.load %arg8[%c0_21, %c0_22] : memref<1x32xf32, #tpu.memory_space<vmem>>, vector<1x32xf32>
    %38 = vector.broadcast %37 : vector<1x32xf32> to vector<16x32xf32>
    %39 = arith.addf %36, %38 : vector<16x32xf32>
    %c0_23 = arith.constant 0 : index
    %c0_24 = arith.constant 0 : index
    %40 = vector.load %arg9[%c0_23, %c0_24] : memref<32x32xbf16, #tpu.memory_space<vmem>>, vector<32x32xbf16>
    %cst_25 = arith.constant dense<0.000000e+00> : vector<16x32xf32>
    %41 = tpu.matmul %29, %40, %cst_25 {dimension_numbers = #tpu.dot_dimension_numbers<[1], [0], [0], [1], [0, 0, 1, 1], [], []>} : vector<16x32xbf16>, vector<32x32xbf16>, vector<16x32xf32> -> vector<16x32xf32>
    %c0_26 = arith.constant 0 : index
    %c0_27 = arith.constant 0 : index
    %42 = vector.load %arg10[%c0_26, %c0_27] : memref<1x32xf32, #tpu.memory_space<vmem>>, vector<1x32xf32>
    %43 = vector.broadcast %42 : vector<1x32xf32> to vector<16x32xf32>
    %44 = arith.addf %41, %43 : vector<16x32xf32>
    %c0_28 = arith.constant 0 : index
    %c0_29 = arith.constant 0 : index
    %c0_30 = arith.constant 0 : index
    %45 = vector.load %arg11[%c0_28, %c0_29, %c0_30] : memref<4x8x32xbf16, #tpu.memory_space<vmem>>, vector<4x8x32xbf16>
    %46 = vector.extract_strided_slice %34 {offsets = [0, 0], sizes = [8, 8], strides = [1, 1]} : vector<16x32xf32> to vector<8x8xf32>
    %47 = vector.extract_strided_slice %34 {offsets = [0, 8], sizes = [8, 8], strides = [1, 1]} : vector<16x32xf32> to vector<8x8xf32>
    %48 = vector.extract_strided_slice %34 {offsets = [0, 16], sizes = [8, 8], strides = [1, 1]} : vector<16x32xf32> to vector<8x8xf32>
    %49 = vector.extract_strided_slice %34 {offsets = [0, 24], sizes = [8, 8], strides = [1, 1]} : vector<16x32xf32> to vector<8x8xf32>
    %50 = vector.shape_cast %46 : vector<8x8xf32> to vector<1x8x8xf32>
    %51 = vector.shape_cast %47 : vector<8x8xf32> to vector<1x8x8xf32>
    %52 = vector.shape_cast %48 : vector<8x8xf32> to vector<1x8x8xf32>
    %53 = vector.shape_cast %49 : vector<8x8xf32> to vector<1x8x8xf32>
    %54 = tpu.concatenate %50, %51, %52, %53 in 0 : vector<1x8x8xf32>, vector<1x8x8xf32>, vector<1x8x8xf32>, vector<1x8x8xf32> -> vector<4x8x8xf32>
    %55 = arith.truncf %54 : vector<4x8x8xf32> to vector<4x8x8xbf16>
    %56 = vector.extract_strided_slice %39 {offsets = [0, 0], sizes = [8, 8], strides = [1, 1]} : vector<16x32xf32> to vector<8x8xf32>
    %57 = vector.extract_strided_slice %39 {offsets = [0, 8], sizes = [8, 8], strides = [1, 1]} : vector<16x32xf32> to vector<8x8xf32>
    %58 = vector.extract_strided_slice %39 {offsets = [0, 16], sizes = [8, 8], strides = [1, 1]} : vector<16x32xf32> to vector<8x8xf32>
    %59 = vector.extract_strided_slice %39 {offsets = [0, 24], sizes = [8, 8], strides = [1, 1]} : vector<16x32xf32> to vector<8x8xf32>
    %60 = vector.shape_cast %56 : vector<8x8xf32> to vector<1x8x8xf32>
    %61 = vector.shape_cast %57 : vector<8x8xf32> to vector<1x8x8xf32>
    %62 = vector.shape_cast %58 : vector<8x8xf32> to vector<1x8x8xf32>
    %63 = vector.shape_cast %59 : vector<8x8xf32> to vector<1x8x8xf32>
    %64 = tpu.concatenate %60, %61, %62, %63 in 0 : vector<1x8x8xf32>, vector<1x8x8xf32>, vector<1x8x8xf32>, vector<1x8x8xf32> -> vector<4x8x8xf32>
    %65 = arith.truncf %64 : vector<4x8x8xf32> to vector<4x8x8xbf16>
    %66 = vector.extract_strided_slice %44 {offsets = [0, 0], sizes = [8, 8], strides = [1, 1]} : vector<16x32xf32> to vector<8x8xf32>
    %67 = vector.extract_strided_slice %44 {offsets = [0, 8], sizes = [8, 8], strides = [1, 1]} : vector<16x32xf32> to vector<8x8xf32>
    %68 = vector.extract_strided_slice %44 {offsets = [0, 16], sizes = [8, 8], strides = [1, 1]} : vector<16x32xf32> to vector<8x8xf32>
    %69 = vector.extract_strided_slice %44 {offsets = [0, 24], sizes = [8, 8], strides = [1, 1]} : vector<16x32xf32> to vector<8x8xf32>
    %70 = vector.shape_cast %66 : vector<8x8xf32> to vector<1x8x8xf32>
    %71 = vector.shape_cast %67 : vector<8x8xf32> to vector<1x8x8xf32>
    %72 = vector.shape_cast %68 : vector<8x8xf32> to vector<1x8x8xf32>
    %73 = vector.shape_cast %69 : vector<8x8xf32> to vector<1x8x8xf32>
    %74 = tpu.concatenate %70, %71, %72, %73 in 0 : vector<1x8x8xf32>, vector<1x8x8xf32>, vector<1x8x8xf32>, vector<1x8x8xf32> -> vector<4x8x8xf32>
    %75 = arith.truncf %74 : vector<4x8x8xf32> to vector<4x8x8xbf16>
    "tpu.trace_start"() <{level = 10 : i32, message = "hqd,hkd->hqk"}> : () -> ()
    %cst_31 = arith.constant dense<0.000000e+00> : vector<4x8x8xf32>
    %76 = tpu.matmul %55, %65, %cst_31 {dimension_numbers = #tpu.dot_dimension_numbers<[2], [2], [1], [1], [0, 0, 0, 1, 1, 1], [0], [0]>} : vector<4x8x8xbf16>, vector<4x8x8xbf16>, vector<4x8x8xf32> -> vector<4x8x8xf32>
    "tpu.trace_stop"() : () -> ()
    %77 = vector.extract_strided_slice %2 {offsets = [0, 0, 0], sizes = [1, 8, 8], strides = [1, 1, 1]} : vector<2x8x8xf32> to vector<1x8x8xf32>
    %78 = vector.shape_cast %77 : vector<1x8x8xf32> to vector<8x8xf32>
    %79 = vector.shape_cast %78 : vector<8x8xf32> to vector<1x8x8xf32>
    %80 = vector.broadcast %79 : vector<1x8x8xf32> to vector<4x8x8xf32>
    %81 = arith.addf %76, %80 : vector<4x8x8xf32>
    %cst_32 = arith.constant -3.40282347E+38 : f32
    %82 = vector.broadcast %cst_32 : f32 to vector<4x8x8xf32>
    %83 = arith.maximumf %81, %82 : vector<4x8x8xf32>
    %cst_33 = arith.constant dense<0xFF800000> : vector<4x8xf32>
    %84 = vector.multi_reduction <maximumf>, %83, %cst_33 [2] : vector<4x8x8xf32> to vector<4x8xf32>
    %cst_34 = arith.constant 0xFF800000 : f32
    %85 = vector.broadcast %cst_34 : f32 to vector<4x8xf32>
    %86 = arith.maximumf %85, %84 : vector<4x8xf32>
    %87 = vector.shape_cast %86 : vector<4x8xf32> to vector<4x8x1xf32>
    %88 = vector.broadcast %87 : vector<4x8x1xf32> to vector<4x8x8xf32>
    %89 = arith.subf %83, %88 : vector<4x8x8xf32>
    %90 = math.exp %89 : vector<4x8x8xf32>
    %cst_35 = arith.constant dense<0.000000e+00> : vector<4x8xf32>
    %91 = vector.multi_reduction <add>, %90, %cst_35 [2] : vector<4x8x8xf32> to vector<4x8xf32>
    %92 = vector.shape_cast %91 : vector<4x8xf32> to vector<4x8x1xf32>
    %93 = vector.broadcast %92 : vector<4x8x1xf32> to vector<4x8x8xf32>
    %94 = arith.divf %90, %93 : vector<4x8x8xf32>
    %95 = arith.truncf %94 : vector<4x8x8xf32> to vector<4x8x8xbf16>
    "tpu.trace_start"() <{level = 10 : i32, message = "hqk,hkd->hqd"}> : () -> ()
    %cst_36 = arith.constant dense<0.000000e+00> : vector<4x8x8xf32>
    %96 = tpu.matmul %95, %75, %cst_36 {dimension_numbers = #tpu.dot_dimension_numbers<[2], [1], [1], [2], [0, 0, 0, 1, 1, 2], [0], [0]>} : vector<4x8x8xbf16>, vector<4x8x8xbf16>, vector<4x8x8xf32> -> vector<4x8x8xf32>
    "tpu.trace_stop"() : () -> ()
    %97 = arith.truncf %96 : vector<4x8x8xf32> to vector<4x8x8xbf16>
    "tpu.trace_start"() <{level = 10 : i32, message = "hqd,hde->hqe"}> : () -> ()
    %cst_37 = arith.constant dense<0.000000e+00> : vector<4x8x32xf32>
    %98 = tpu.matmul %97, %45, %cst_37 {dimension_numbers = #tpu.dot_dimension_numbers<[2], [1], [1], [2], [0, 0, 0, 1, 1, 2], [0], [0]>} : vector<4x8x8xbf16>, vector<4x8x32xbf16>, vector<4x8x32xf32> -> vector<4x8x32xf32>
    "tpu.trace_stop"() : () -> ()
    %cst_38 = arith.constant dense<0.000000e+00> : vector<8x32xf32>
    %99 = vector.multi_reduction <add>, %98, %cst_38 [0] : vector<4x8x32xf32> to vector<8x32xf32>
    %100 = vector.extract_strided_slice %34 {offsets = [8, 0], sizes = [8, 8], strides = [1, 1]} : vector<16x32xf32> to vector<8x8xf32>
    %101 = vector.extract_strided_slice %34 {offsets = [8, 8], sizes = [8, 8], strides = [1, 1]} : vector<16x32xf32> to vector<8x8xf32>
    %102 = vector.extract_strided_slice %34 {offsets = [8, 16], sizes = [8, 8], strides = [1, 1]} : vector<16x32xf32> to vector<8x8xf32>
    %103 = vector.extract_strided_slice %34 {offsets = [8, 24], sizes = [8, 8], strides = [1, 1]} : vector<16x32xf32> to vector<8x8xf32>
    %104 = vector.shape_cast %100 : vector<8x8xf32> to vector<1x8x8xf32>
    %105 = vector.shape_cast %101 : vector<8x8xf32> to vector<1x8x8xf32>
    %106 = vector.shape_cast %102 : vector<8x8xf32> to vector<1x8x8xf32>
    %107 = vector.shape_cast %103 : vector<8x8xf32> to vector<1x8x8xf32>
    %108 = tpu.concatenate %104, %105, %106, %107 in 0 : vector<1x8x8xf32>, vector<1x8x8xf32>, vector<1x8x8xf32>, vector<1x8x8xf32> -> vector<4x8x8xf32>
    %109 = arith.truncf %108 : vector<4x8x8xf32> to vector<4x8x8xbf16>
    %110 = vector.extract_strided_slice %39 {offsets = [8, 0], sizes = [8, 8], strides = [1, 1]} : vector<16x32xf32> to vector<8x8xf32>
    %111 = vector.extract_strided_slice %39 {offsets = [8, 8], sizes = [8, 8], strides = [1, 1]} : vector<16x32xf32> to vector<8x8xf32>
    %112 = vector.extract_strided_slice %39 {offsets = [8, 16], sizes = [8, 8], strides = [1, 1]} : vector<16x32xf32> to vector<8x8xf32>
    %113 = vector.extract_strided_slice %39 {offsets = [8, 24], sizes = [8, 8], strides = [1, 1]} : vector<16x32xf32> to vector<8x8xf32>
    %114 = vector.shape_cast %110 : vector<8x8xf32> to vector<1x8x8xf32>
    %115 = vector.shape_cast %111 : vector<8x8xf32> to vector<1x8x8xf32>
    %116 = vector.shape_cast %112 : vector<8x8xf32> to vector<1x8x8xf32>
    %117 = vector.shape_cast %113 : vector<8x8xf32> to vector<1x8x8xf32>
    %118 = tpu.concatenate %114, %115, %116, %117 in 0 : vector<1x8x8xf32>, vector<1x8x8xf32>, vector<1x8x8xf32>, vector<1x8x8xf32> -> vector<4x8x8xf32>
    %119 = arith.truncf %118 : vector<4x8x8xf32> to vector<4x8x8xbf16>
    %120 = vector.extract_strided_slice %44 {offsets = [8, 0], sizes = [8, 8], strides = [1, 1]} : vector<16x32xf32> to vector<8x8xf32>
    %121 = vector.extract_strided_slice %44 {offsets = [8, 8], sizes = [8, 8], strides = [1, 1]} : vector<16x32xf32> to vector<8x8xf32>
    %122 = vector.extract_strided_slice %44 {offsets = [8, 16], sizes = [8, 8], strides = [1, 1]} : vector<16x32xf32> to vector<8x8xf32>
    %123 = vector.extract_strided_slice %44 {offsets = [8, 24], sizes = [8, 8], strides = [1, 1]} : vector<16x32xf32> to vector<8x8xf32>
    %124 = vector.shape_cast %120 : vector<8x8xf32> to vector<1x8x8xf32>
    %125 = vector.shape_cast %121 : vector<8x8xf32> to vector<1x8x8xf32>
    %126 = vector.shape_cast %122 : vector<8x8xf32> to vector<1x8x8xf32>
    %127 = vector.shape_cast %123 : vector<8x8xf32> to vector<1x8x8xf32>
    %128 = tpu.concatenate %124, %125, %126, %127 in 0 : vector<1x8x8xf32>, vector<1x8x8xf32>, vector<1x8x8xf32>, vector<1x8x8xf32> -> vector<4x8x8xf32>
    %129 = arith.truncf %128 : vector<4x8x8xf32> to vector<4x8x8xbf16>
    "tpu.trace_start"() <{level = 10 : i32, message = "hqd,hkd->hqk"}> : () -> ()
    %cst_39 = arith.constant dense<0.000000e+00> : vector<4x8x8xf32>
    %130 = tpu.matmul %109, %119, %cst_39 {dimension_numbers = #tpu.dot_dimension_numbers<[2], [2], [1], [1], [0, 0, 0, 1, 1, 1], [0], [0]>} : vector<4x8x8xbf16>, vector<4x8x8xbf16>, vector<4x8x8xf32> -> vector<4x8x8xf32>
    "tpu.trace_stop"() : () -> ()
    %131 = vector.extract_strided_slice %2 {offsets = [1, 0, 0], sizes = [1, 8, 8], strides = [1, 1, 1]} : vector<2x8x8xf32> to vector<1x8x8xf32>
    %132 = vector.shape_cast %131 : vector<1x8x8xf32> to vector<8x8xf32>
    %133 = vector.shape_cast %132 : vector<8x8xf32> to vector<1x8x8xf32>
    %134 = vector.broadcast %133 : vector<1x8x8xf32> to vector<4x8x8xf32>
    %135 = arith.addf %130, %134 : vector<4x8x8xf32>
    %cst_40 = arith.constant -3.40282347E+38 : f32
    %136 = vector.broadcast %cst_40 : f32 to vector<4x8x8xf32>
    %137 = arith.maximumf %135, %136 : vector<4x8x8xf32>
    %cst_41 = arith.constant dense<0xFF800000> : vector<4x8xf32>
    %138 = vector.multi_reduction <maximumf>, %137, %cst_41 [2] : vector<4x8x8xf32> to vector<4x8xf32>
    %cst_42 = arith.constant 0xFF800000 : f32
    %139 = vector.broadcast %cst_42 : f32 to vector<4x8xf32>
    %140 = arith.maximumf %139, %138 : vector<4x8xf32>
    %141 = vector.shape_cast %140 : vector<4x8xf32> to vector<4x8x1xf32>
    %142 = vector.broadcast %141 : vector<4x8x1xf32> to vector<4x8x8xf32>
    %143 = arith.subf %137, %142 : vector<4x8x8xf32>
    %144 = math.exp %143 : vector<4x8x8xf32>
    %cst_43 = arith.constant dense<0.000000e+00> : vector<4x8xf32>
    %145 = vector.multi_reduction <add>, %144, %cst_43 [2] : vector<4x8x8xf32> to vector<4x8xf32>
    %146 = vector.shape_cast %145 : vector<4x8xf32> to vector<4x8x1xf32>
    %147 = vector.broadcast %146 : vector<4x8x1xf32> to vector<4x8x8xf32>
    %148 = arith.divf %144, %147 : vector<4x8x8xf32>
    %149 = arith.truncf %148 : vector<4x8x8xf32> to vector<4x8x8xbf16>
    "tpu.trace_start"() <{level = 10 : i32, message = "hqk,hkd->hqd"}> : () -> ()
    %cst_44 = arith.constant dense<0.000000e+00> : vector<4x8x8xf32>
    %150 = tpu.matmul %149, %129, %cst_44 {dimension_numbers = #tpu.dot_dimension_numbers<[2], [1], [1], [2], [0, 0, 0, 1, 1, 2], [0], [0]>} : vector<4x8x8xbf16>, vector<4x8x8xbf16>, vector<4x8x8xf32> -> vector<4x8x8xf32>
    "tpu.trace_stop"() : () -> ()
    %151 = arith.truncf %150 : vector<4x8x8xf32> to vector<4x8x8xbf16>
    "tpu.trace_start"() <{level = 10 : i32, message = "hqd,hde->hqe"}> : () -> ()
    %cst_45 = arith.constant dense<0.000000e+00> : vector<4x8x32xf32>
    %152 = tpu.matmul %151, %45, %cst_45 {dimension_numbers = #tpu.dot_dimension_numbers<[2], [1], [1], [2], [0, 0, 0, 1, 1, 2], [0], [0]>} : vector<4x8x8xbf16>, vector<4x8x32xbf16>, vector<4x8x32xf32> -> vector<4x8x32xf32>
    "tpu.trace_stop"() : () -> ()
    %cst_46 = arith.constant dense<0.000000e+00> : vector<8x32xf32>
    %153 = vector.multi_reduction <add>, %152, %cst_46 [0] : vector<4x8x32xf32> to vector<8x32xf32>
    %154 = tpu.concatenate %99, %153 in 0 : vector<8x32xf32>, vector<8x32xf32> -> vector<16x32xf32>
    %c0_47 = arith.constant 0 : index
    %c0_48 = arith.constant 0 : index
    %155 = vector.load %arg12[%c0_47, %c0_48] : memref<1x32xf32, #tpu.memory_space<vmem>>, vector<1x32xf32>
    %156 = vector.broadcast %155 : vector<1x32xf32> to vector<16x32xf32>
    %157 = arith.addf %154, %156 : vector<16x32xf32>
    %158 = arith.addf %1, %157 : vector<16x32xf32>
    %c0_49 = arith.constant 0 : index
    %c0_50 = arith.constant 0 : index
    %159 = vector.load %arg13[%c0_49, %c0_50] : memref<1x32xf32, #tpu.memory_space<vmem>>, vector<1x32xf32>
    %c0_51 = arith.constant 0 : index
    %c0_52 = arith.constant 0 : index
    %160 = vector.load %arg14[%c0_51, %c0_52] : memref<1x32xf32, #tpu.memory_space<vmem>>, vector<1x32xf32>
    %cst_53 = arith.constant dense<0.000000e+00> : vector<16xf32>
    %161 = vector.multi_reduction <add>, %158, %cst_53 [1] : vector<16x32xf32> to vector<16xf32>
    %162 = vector.shape_cast %161 : vector<16xf32> to vector<16x1xf32>
    %cst_54 = arith.constant 3.200000e+01 : f32
    %163 = vector.broadcast %cst_54 : f32 to vector<16x1xf32>
    %164 = arith.divf %162, %163 : vector<16x1xf32>
    %165 = vector.broadcast %164 : vector<16x1xf32> to vector<16x32xf32>
    %166 = arith.subf %158, %165 : vector<16x32xf32>
    %167 = vector.broadcast %164 : vector<16x1xf32> to vector<16x32xf32>
    %168 = arith.subf %158, %167 : vector<16x32xf32>
    %169 = arith.mulf %166, %168 : vector<16x32xf32>
    %cst_55 = arith.constant dense<0.000000e+00> : vector<16xf32>
    %170 = vector.multi_reduction <add>, %169, %cst_55 [1] : vector<16x32xf32> to vector<16xf32>
    %171 = vector.shape_cast %170 : vector<16xf32> to vector<16x1xf32>
    %cst_56 = arith.constant 3.200000e+01 : f32
    %172 = vector.broadcast %cst_56 : f32 to vector<16x1xf32>
    %173 = arith.divf %171, %172 : vector<16x1xf32>
    %174 = vector.broadcast %164 : vector<16x1xf32> to vector<16x32xf32>
    %175 = arith.subf %158, %174 : vector<16x32xf32>
    %cst_57 = arith.constant 9.99999974E-6 : f32
    %176 = vector.broadcast %cst_57 : f32 to vector<16x1xf32>
    %177 = arith.addf %173, %176 : vector<16x1xf32>
    %178 = math.rsqrt %177 : vector<16x1xf32>
    %179 = vector.broadcast %178 : vector<16x1xf32> to vector<16x32xf32>
    %180 = arith.mulf %175, %179 : vector<16x32xf32>
    %181 = vector.broadcast %159 : vector<1x32xf32> to vector<16x32xf32>
    %182 = arith.mulf %180, %181 : vector<16x32xf32>
    %183 = vector.broadcast %160 : vector<1x32xf32> to vector<16x32xf32>
    %184 = arith.addf %182, %183 : vector<16x32xf32>
    %185 = arith.truncf %184 : vector<16x32xf32> to vector<16x32xbf16>
    %c0_58 = arith.constant 0 : index
    %c0_59 = arith.constant 0 : index
    %186 = vector.load %arg15[%c0_58, %c0_59] : memref<32x128xbf16, #tpu.memory_space<vmem>>, vector<32x128xbf16>
    %cst_60 = arith.constant dense<0.000000e+00> : vector<16x128xf32>
    %187 = tpu.matmul %185, %186, %cst_60 {dimension_numbers = #tpu.dot_dimension_numbers<[1], [0], [0], [1], [0, 0, 1, 1], [], []>} : vector<16x32xbf16>, vector<32x128xbf16>, vector<16x128xf32> -> vector<16x128xf32>
    %c0_61 = arith.constant 0 : index
    %c0_62 = arith.constant 0 : index
    %188 = vector.load %arg16[%c0_61, %c0_62] : memref<1x128xf32, #tpu.memory_space<vmem>>, vector<1x128xf32>
    %189 = vector.broadcast %188 : vector<1x128xf32> to vector<16x128xf32>
    %190 = arith.addf %187, %189 : vector<16x128xf32>
    %cst_63 = arith.constant 0.000000e+00 : f32
    %191 = vector.broadcast %cst_63 : f32 to vector<16x128xf32>
    %192 = arith.maximumf %190, %191 : vector<16x128xf32>
    %193 = arith.truncf %192 : vector<16x128xf32> to vector<16x128xbf16>
    %c0_64 = arith.constant 0 : index
    %c0_65 = arith.constant 0 : index
    %194 = vector.load %arg17[%c0_64, %c0_65] : memref<128x32xbf16, #tpu.memory_space<vmem>>, vector<128x32xbf16>
    %cst_66 = arith.constant dense<0.000000e+00> : vector<16x32xf32>
    %195 = tpu.matmul %193, %194, %cst_66 {dimension_numbers = #tpu.dot_dimension_numbers<[1], [0], [0], [1], [0, 0, 1, 1], [], []>} : vector<16x128xbf16>, vector<128x32xbf16>, vector<16x32xf32> -> vector<16x32xf32>
    %c0_67 = arith.constant 0 : index
    %c0_68 = arith.constant 0 : index
    %196 = vector.load %arg18[%c0_67, %c0_68] : memref<1x32xf32, #tpu.memory_space<vmem>>, vector<1x32xf32>
    %197 = vector.broadcast %196 : vector<1x32xf32> to vector<16x32xf32>
    %198 = arith.addf %195, %197 : vector<16x32xf32>
    %199 = arith.addf %158, %198 : vector<16x32xf32>
    %200 = vector.shape_cast %199 : vector<16x32xf32> to vector<2x8x32xf32>
    %c0_69 = arith.constant 0 : index
    %c0_70 = arith.constant 0 : index
    %c0_71 = arith.constant 0 : index
    %201 = vector.load %arg19[%c0_69, %c0_70, %c0_71] : memref<2x8x32xf32, #tpu.memory_space<vmem>>, vector<2x8x32xf32>
    tpu.vector_store %arg19[%c0_69, %c0_70, %c0_71], %200 {strides = array<i32>} : memref<2x8x32xf32, #tpu.memory_space<vmem>>, vector<2x8x32xf32>,
    return
  }
  func.func @transform_0(%arg0: i32) -> (i32, i32, i32) {
    %c0_i32 = arith.constant 0 : i32
    %c0_i32_0 = arith.constant 0 : i32
    %c0_i32_1 = arith.constant 0 : i32
    return %arg0, %c0_i32, %c0_i32_0 : i32, i32, i32
  }
  func.func @transform_1(%arg0: i32) -> (i32, i32, i32) {
    %c0_i32 = arith.constant 0 : i32
    %c0_i32_0 = arith.constant 0 : i32
    %c0_i32_1 = arith.constant 0 : i32
    return %arg0, %c0_i32, %c0_i32_0 : i32, i32, i32
  }
  func.func @transform_2(%arg0: i32) -> (i32, i32) {
    %c0_i32 = arith.constant 0 : i32
    %c0_i32_0 = arith.constant 0 : i32
    %c0_i32_1 = arith.constant 0 : i32
    return %c0_i32, %c0_i32_0 : i32, i32
  }
  func.func @transform_3(%arg0: i32) -> (i32, i32) {
    %c0_i32 = arith.constant 0 : i32
    %c0_i32_0 = arith.constant 0 : i32
    %c0_i32_1 = arith.constant 0 : i32
    return %c0_i32, %c0_i32_0 : i32, i32
  }
  func.func @transform_4(%arg0: i32) -> (i32, i32) {
    %c0_i32 = arith.constant 0 : i32
    %c0_i32_0 = arith.constant 0 : i32
    %c0_i32_1 = arith.constant 0 : i32
    return %c0_i32, %c0_i32_0 : i32, i32
  }
  func.func @transform_5(%arg0: i32) -> (i32, i32) {
    %c0_i32 = arith.constant 0 : i32
    %c0_i32_0 = arith.constant 0 : i32
    %c0_i32_1 = arith.constant 0 : i32
    return %c0_i32, %c0_i32_0 : i32, i32
  }
  func.func @transform_6(%arg0: i32) -> (i32, i32) {
    %c0_i32 = arith.constant 0 : i32
    %c0_i32_0 = arith.constant 0 : i32
    %c0_i32_1 = arith.constant 0 : i32
    return %c0_i32, %c0_i32_0 : i32, i32
  }
  func.func @transform_7(%arg0: i32) -> (i32, i32) {
    %c0_i32 = arith.constant 0 : i32
    %c0_i32_0 = arith.constant 0 : i32
    %c0_i32_1 = arith.constant 0 : i32
    return %c0_i32, %c0_i32_0 : i32, i32
  }
  func.func @transform_8(%arg0: i32) -> (i32, i32) {
    %c0_i32 = arith.constant 0 : i32
    %c0_i32_0 = arith.constant 0 : i32
    %c0_i32_1 = arith.constant 0 : i32
    return %c0_i32, %c0_i32_0 : i32, i32
  }
  func.func @transform_9(%arg0: i32) -> (i32, i32) {
    %c0_i32 = arith.constant 0 : i32
    %c0_i32_0 = arith.constant 0 : i32
    %c0_i32_1 = arith.constant 0 : i32
    return %c0_i32, %c0_i32_0 : i32, i32
  }
  func.func @transform_10(%arg0: i32) -> (i32, i32, i32) {
    %c0_i32 = arith.constant 0 : i32
    %c0_i32_0 = arith.constant 0 : i32
    %c0_i32_1 = arith.constant 0 : i32
    %c0_i32_2 = arith.constant 0 : i32
    return %c0_i32, %c0_i32_0, %c0_i32_1 : i32, i32, i32
  }
  func.func @transform_11(%arg0: i32) -> (i32, i32) {
    %c0_i32 = arith.constant 0 : i32
    %c0_i32_0 = arith.constant 0 : i32
    %c0_i32_1 = arith.constant 0 : i32
    return %c0_i32, %c0_i32_0 : i32, i32
  }
  func.func @transform_12(%arg0: i32) -> (i32, i32) {
    %c0_i32 = arith.constant 0 : i32
    %c0_i32_0 = arith.constant 0 : i32
    %c0_i32_1 = arith.constant 0 : i32
    return %c0_i32, %c0_i32_0 : i32, i32
  }
  func.func @transform_13(%arg0: i32) -> (i32, i32) {
    %c0_i32 = arith.constant 0 : i32
    %c0_i32_0 = arith.constant 0 : i32
    %c0_i32_1 = arith.constant 0 : i32
    return %c0_i32, %c0_i32_0 : i32, i32
  }
  func.func @transform_14(%arg0: i32) -> (i32, i32) {
    %c0_i32 = arith.constant 0 : i32
    %c0_i32_0 = arith.constant 0 : i32
    %c0_i32_1 = arith.constant 0 : i32
    return %c0_i32, %c0_i32_0 : i32, i32
  }
  func.func @transform_15(%arg0: i32) -> (i32, i32) {
    %c0_i32 = arith.constant 0 : i32
    %c0_i32_0 = arith.constant 0 : i32
    %c0_i32_1 = arith.constant 0 : i32
    return %c0_i32, %c0_i32_0 : i32, i32
  }
  func.func @transform_16(%arg0: i32) -> (i32, i32) {
    %c0_i32 = arith.constant 0 : i32
    %c0_i32_0 = arith.constant 0 : i32
    %c0_i32_1 = arith.constant 0 : i32
    return %c0_i32, %c0_i32_0 : i32, i32
  }
  func.func @transform_17(%arg0: i32) -> (i32, i32) {
    %c0_i32 = arith.constant 0 : i32
    %c0_i32_0 = arith.constant 0 : i32
    %c0_i32_1 = arith.constant 0 : i32
    return %c0_i32, %c0_i32_0 : i32, i32
  }
  func.func @transform_18(%arg0: i32) -> (i32, i32, i32) {
    %c0_i32 = arith.constant 0 : i32
    %c0_i32_0 = arith.constant 0 : i32
    %c0_i32_1 = arith.constant 0 : i32
    return %arg0, %c0_i32, %c0_i32_0 : i32, i32, i32
  }
}

</mosaic_0001>

<bundles_post_ra>
// kernel: tpu_custom_call.1
= control target key start
LH: loop header
LB: loop body
LE: loop exit
PB: predicated region body
PF: predicated region fallthrough
CT: control target
= control target key end

     0   :  { %s3086_s0 = inlined_call_operand.vmem [shape: f32[2,8,32], index: 0, kind: input, shape index: {}]   ;;  %s3087_s1 = inlined_call_operand.vmem [shape: f32[2,8,8], index: 1, kind: input, shape index: {}]   ;;  %s3088_s2 = inlined_call_operand.vmem [shape: f32[1,32], index: 2, kind: input, shape index: {}]   ;;  %s3089_s3 = inlined_call_operand.hbm [shape: f32[1,32], index: 3, kind: input, shape index: {}]   ;;  %s3090_s4 = inlined_call_operand.vmem [shape: bf16[32,32], index: 4, kind: input, shape index: {}]   ;;  %s3091_s5 = inlined_call_operand.hbm [shape: f32[1,32], index: 5, kind: input, shape index: {}]   ;;  %s3092_s6 = inlined_call_operand.vmem [shape: bf16[32,32], index: 6, kind: input, shape index: {}]   ;;  %s3093_s7 = inlined_call_operand.hbm [shape: f32[1,32], index: 7, kind: input, shape index: {}]   ;;  %s3094_s8 = inlined_call_operand.vmem [shape: bf16[32,32], index: 8, kind: input, shape index: {}]   ;;  %s3095_s9 = inlined_call_operand.hbm [shape: f32[1,32], index: 9, kind: input, shape index: {}]   ;;  %s3096_s10 = inlined_call_operand.vmem [shape: bf16[4,8,32], index: 10, kind: input, shape index: {}]   ;;  %s3097_s11 = inlined_call_operand.hbm [shape: f32[1,32], index: 11, kind: input, shape index: {}]   ;;  %s3098_s12 = inlined_call_operand.hbm [shape: f32[1,32], index: 12, kind: input, shape index: {}]   ;;  %s3099_s13 = inlined_call_operand.hbm [shape: f32[1,32], index: 13, kind: input, shape index: {}]   ;;  %s3100_s14 = inlined_call_operand.vmem [shape: bf16[32,128], index: 14, kind: input, shape index: {}]   ;;  %s3101_s15 = inlined_call_operand.vmem [shape: f32[1,128], index: 15, kind: input, shape index: {}]   ;;  %s3102_s16 = inlined_call_operand.vmem [shape: bf16[128,32], index: 16, kind: input, shape index: {}]   ;;  %s3103_s17 = inlined_call_operand.vmem [shape: f32[1,32], index: 17, kind: input, shape index: {}]   ;;  %s3104_s18 = inlined_call_operand.hbm [shape: f32[2,8,32], index: 18, kind: output, shape index: {}]  }
   0x1   :  { %3107 = sst [smem:[#allocation20_spill]] %s3086_s0 }
   0x2   :  { %3108 = sst [smem:[#allocation21_spill]] %s3087_s1 }
   0x3   :  { %3109 = sst [smem:[#allocation22_spill]] %s3088_s2 }
   0x4   :  { %23 = vsyncpa [#allocation3], 0 }
   0x5   :  { %24 = vsyncpa [#allocation6], 0 }
   0x6   :  { %25 = vsyncpa [#allocation9], 0 }
   0x7   :  { %26 = vsyncpa [#allocation12], 0 }
   0x8   :  { %27 = vsyncpa [#allocation4], 0  ;;  %s2535_s27 = smov [#allocation5]   ;;  %s2536_s29 = smov [#allocation8]  }
   0x9   :  { %s52_s28 = sshll.u32 %s2535_s27, 4  ;;  %s76_s30 = sshll.u32 %s2536_s29, 4  ;;  %s53_s28 = int_to_ptr.vmem [resolvable:$true] %s52_s28  ;;  %s77_s30 = int_to_ptr.vmem [resolvable:$true] %s76_s30 }
   0xa   :  { %s2349_s1 = scalar_lea.hbm %s3091_s5, 16 }
   0xb   :  { %p2350_p0 = scmp.ne.s32.totalorder %s3091_s5, %s2349_s1  ;;  %p2353_p1 = scmp.lt.u32.totalorder %s2349_s1, %s3091_s5 }
   0xd   :  { %p2355_p2 = pnand %p2353_p1, %p2350_p0 }
   0xf   :  { %2358 = shalt.err (!%p2355_p2)
}
  0x10   :  { %s2359_s23 = scalar_lea.vmem %s53_s28, 16  ;;  %s2363_s24 = scalar_lea.vmem %s53_s28, 32 }
  0x11   :  { %p2360_p3 = scmp.ne.s32.totalorder %s53_s28, %s2359_s23  ;;  %p2364_p4 = scmp.lt.s32.totalorder %s53_s28, %s53_s28 }
  0x12   :  { %p2365_p5 = scmp.lt.s32.totalorder %s2363_s24, %s2359_s23 }
  0x14   :  { %p2366_p6 = por %p2365_p5, %p2364_p4 }
  0x16   :  { %p2367_p7 = pnand %p2366_p6, %p2360_p3 }
  0x18   :  { %2370 = shalt.err (!%p2367_p7)
}
  0x19   :  { %55 = dma.hbm_to_vmem [thread:$0]  %s3091_s5, 16, %s53_s28, [#allocation6]  }
  0x1a   :  { %s2371_s0 = scalar_lea.hbm %s3095_s9, 16 }
  0x1b   :  { %p2372_p8 = scmp.ne.s32.totalorder %s3095_s9, %s2371_s0  ;;  %p2375_p9 = scmp.lt.u32.totalorder %s2371_s0, %s3095_s9 }
  0x1d   :  { %p2377_p10 = pnand %p2375_p9, %p2372_p8 }
  0x1f   :  { %2380 = shalt.err (!%p2377_p10)
}
  0x20   :  { %s2381_s22 = scalar_lea.vmem %s77_s30, 16  ;;  %s2385_s2 = scalar_lea.vmem %s77_s30, 32 }
  0x21   :  { %p2382_p11 = scmp.ne.s32.totalorder %s77_s30, %s2381_s22  ;;  %p2386_p12 = scmp.lt.s32.totalorder %s77_s30, %s77_s30 }
  0x22   :  { %p2387_p13 = scmp.lt.s32.totalorder %s2385_s2, %s2381_s22 }
  0x24   :  { %p2388_p0 = por %p2387_p13, %p2386_p12 }
  0x26   :  { %p2389_p1 = pnand %p2388_p0, %p2382_p11 }
  0x28   :  { %2392 = shalt.err (!%p2389_p1)
}
  0x29   :  { %79 = dma.hbm_to_vmem [thread:$0]  %s3095_s9, 16, %s77_s30, [#allocation9]  }
  0x2a   :  { %s2537_s23 = smov [#allocation11]   ;;  %s2538_s25 = smov [#allocation2]  }
  0x2b   :  { %s98_s24 = sshll.u32 %s2537_s23, 4  ;;  %s40_s26 = sshll.u32 %s2538_s25, 4  ;;  %s99_s24 = int_to_ptr.vmem [resolvable:$true] %s98_s24  ;;  %s41_s26 = int_to_ptr.vmem [resolvable:$true] %s40_s26 }
  0x2c   :  { %s2393_s0 = scalar_lea.hbm %s3098_s12, 16 }
  0x2d   :  { %p2394_p2 = scmp.ne.s32.totalorder %s3098_s12, %s2393_s0  ;;  %p2397_p3 = scmp.lt.u32.totalorder %s2393_s0, %s3098_s12 }
  0x2f   :  { %p2399_p4 = pnand %p2397_p3, %p2394_p2 }
  0x31   :  { %2402 = shalt.err (!%p2399_p4)
}
  0x32   :  { %s2403_s9 = scalar_lea.vmem %s99_s24, 16  ;;  %s2407_s30 = scalar_lea.vmem %s99_s24, 32 }
  0x33   :  { %p2404_p5 = scmp.ne.s32.totalorder %s99_s24, %s2403_s9  ;;  %p2408_p6 = scmp.lt.s32.totalorder %s99_s24, %s99_s24 }
  0x34   :  { %p2409_p7 = scmp.lt.s32.totalorder %s2407_s30, %s2403_s9 }
  0x36   :  { %p2410_p8 = por %p2409_p7, %p2408_p6 }
  0x38   :  { %p2411_p9 = pnand %p2410_p8, %p2404_p5 }
  0x3a   :  { %2414 = shalt.err (!%p2411_p9)
}
  0x3b   :  { %101 = dma.hbm_to_vmem [thread:$0]  %s3098_s12, 16, %s99_s24, [#allocation12]  }
  0x3c   :  { %s2415_s23 = scalar_lea.hbm %s3089_s3, 16 }
  0x3d   :  { %p2416_p10 = scmp.ne.s32.totalorder %s3089_s3, %s2415_s23  ;;  %p2419_p11 = scmp.lt.u32.totalorder %s2415_s23, %s3089_s3 }
  0x3f   :  { %p2421_p12 = pnand %p2419_p11, %p2416_p10 }
  0x41   :  { %2424 = shalt.err (!%p2421_p12)
}
  0x42   :  { %s2425_s19 = scalar_lea.vmem %s41_s26, 16  ;;  %s2429_s1 = scalar_lea.vmem %s41_s26, 32 }
  0x43   :  { %p2426_p13 = scmp.ne.s32.totalorder %s41_s26, %s2425_s19  ;;  %p2430_p0 = scmp.lt.s32.totalorder %s41_s26, %s41_s26 }
  0x44   :  { %p2431_p1 = scmp.lt.s32.totalorder %s2429_s1, %s2425_s19 }
  0x46   :  { %p2432_p2 = por %p2431_p1, %p2430_p0 }
  0x48   :  { %p2433_p3 = pnand %p2432_p2, %p2426_p13 }
  0x4a   :  { %2436 = shalt.err (!%p2433_p3)
}
  0x4b   :  { %43 = dma.hbm_to_vmem [thread:$0]  %s3089_s3, 16, %s41_s26, [#allocation3]  }
  0x4c   :  { %s2539_s20 = smov [#allocation7]   ;;  %s2540_s9 = smov [#allocation10]  }
  0x4d   :  { %s64_s21 = sshll.u32 %s2539_s20, 4  ;;  %s88_s30 = sshll.u32 %s2540_s9, 4  ;;  %s65_s21 = int_to_ptr.vmem [resolvable:$true] %s64_s21  ;;  %s89_s30 = int_to_ptr.vmem [resolvable:$true] %s88_s30 }
  0x4e   :  { %s2437_s5 = scalar_lea.hbm %s3093_s7, 16 }
  0x4f   :  { %p2438_p4 = scmp.ne.s32.totalorder %s3093_s7, %s2437_s5  ;;  %p2441_p5 = scmp.lt.u32.totalorder %s2437_s5, %s3093_s7 }
  0x51   :  { %p2443_p6 = pnand %p2441_p5, %p2438_p4 }
  0x53   :  { %2446 = shalt.err (!%p2443_p6)
}
  0x54   :  { %s2447_s3 = scalar_lea.vmem %s65_s21, 16  ;;  %s2451_s26 = scalar_lea.vmem %s65_s21, 32 }
  0x55   :  { %p2448_p7 = scmp.ne.s32.totalorder %s65_s21, %s2447_s3  ;;  %p2452_p8 = scmp.lt.s32.totalorder %s65_s21, %s65_s21 }
  0x56   :  { %p2453_p9 = scmp.lt.s32.totalorder %s2451_s26, %s2447_s3 }
  0x58   :  { %p2454_p10 = por %p2453_p9, %p2452_p8 }
  0x5a   :  { %p2455_p11 = pnand %p2454_p10, %p2448_p7 }
  0x5c   :  { %2458 = shalt.err (!%p2455_p11)
}
  0x5d   :  { %67 = dma.hbm_to_vmem [thread:$0]  %s3093_s7, 16, %s65_s21, [#allocation6]  }
  0x5e   :  { %s2459_s12 = scalar_lea.hbm %s3097_s11, 16 }
  0x5f   :  { %p2460_p12 = scmp.ne.s32.totalorder %s3097_s11, %s2459_s12  ;;  %p2463_p13 = scmp.lt.u32.totalorder %s2459_s12, %s3097_s11 }
  0x61   :  { %p2465_p0 = pnand %p2463_p13, %p2460_p12 }
  0x63   :  { %2468 = shalt.err (!%p2465_p0)
}
  0x64   :  { %s2469_s2 = scalar_lea.vmem %s89_s30, 16  ;;  %s2473_s5 = scalar_lea.vmem %s89_s30, 32 }
  0x65   :  { %p2470_p1 = scmp.ne.s32.totalorder %s89_s30, %s2469_s2  ;;  %p2474_p2 = scmp.lt.s32.totalorder %s89_s30, %s89_s30 }
  0x66   :  { %p2475_p3 = scmp.lt.s32.totalorder %s2473_s5, %s2469_s2 }
  0x68   :  { %p2476_p4 = por %p2475_p3, %p2474_p2 }
  0x6a   :  { %p2477_p5 = pnand %p2476_p4, %p2470_p1 }
  0x6c   :  { %2480 = shalt.err (!%p2477_p5)
}
  0x6d   :  { %91 = dma.hbm_to_vmem [thread:$0]  %s3097_s11, 16, %s89_s30, [#allocation9]  }
  0x6e   :  { %s2541_s28 = smov [#allocation13]   ;;  %s2481_s3 = scalar_lea.hbm %s3099_s13, 16 }
  0x6f   :  { %s108_s23 = sshll.u32 %s2541_s28, 4  ;;  %p2482_p6 = scmp.ne.s32.totalorder %s3099_s13, %s2481_s3  ;;  %s109_s23 = int_to_ptr.vmem [resolvable:$true] %s108_s23 }
  0x70   :  { %p2485_p7 = scmp.lt.u32.totalorder %s2481_s3, %s3099_s13 }
  0x72   :  { %p2487_p8 = pnand %p2485_p7, %p2482_p6 }
  0x74   :  { %2490 = shalt.err (!%p2487_p8)
}
  0x75   :  { %s2491_s1 = scalar_lea.vmem %s109_s23, 16  ;;  %s2495_s11 = scalar_lea.vmem %s109_s23, 32 }
  0x76   :  { %p2492_p9 = scmp.ne.s32.totalorder %s109_s23, %s2491_s1  ;;  %p2496_p10 = scmp.lt.s32.totalorder %s109_s23, %s109_s23 }
  0x77   :  { %p2497_p11 = scmp.lt.s32.totalorder %s2495_s11, %s2491_s1 }
  0x79   :  { %p2498_p12 = por %p2497_p11, %p2496_p10 }
  0x7b   :  { %p2499_p13 = pnand %p2498_p12, %p2492_p9 }
  0x7d   :  { %2502 = shalt.err (!%p2499_p13)
}
  0x7e   :  { %111 = dma.hbm_to_vmem [thread:$0]  %s3099_s13, 16, %s109_s23, [#allocation12]  }
  0x7f   :  { %2525 = dma.done.wait [#allocation3], 16  }
  0x80   :  { %2526 = vsyncadd [#allocation3], 4294967280 }
  0x81   :  { %2527 = dma.done.wait [#allocation6], 32  }
  0x82   :  { %2528 = vsyncadd [#allocation6], 4294967264 }
  0x83   :  { %2529 = dma.done.wait [#allocation9], 32  }
  0x84   :  { %2530 = vsyncadd [#allocation9], 4294967264 }
  0x85   :  { %2531 = dma.done.wait [#allocation12], 32  }
  0x86   :  { %2532 = vsyncadd [#allocation12], 4294967264  ;;  %vm148_vm0 = vcmask 261120   ;;  %s3110_s9 = sld [smem:[#allocation20_spill]]  ;;  %v2292_v14 = vld [vmem:[%s3090_s4] sm:$0xff]   ;;  %v2542_v15 = vmov 0.0  }
  0x87   :  { %2081 = vmatprep.subr.bf16.mxu1 %v2542_v15  ;;  %2111 = vmatprep.subr.bf16.mxu0 %v2542_v15  ;;  %v2293_v16 = vld [vmem:[%s3090_s4 + $0x8] sm:$0xff]   ;;  %vm2543_vm1 = vmmov 0   ;;  %s3111_s23 = sld [smem:[#allocation22_spill]]  ;;  %v1959_v29 = vld [vmem:[#allocation2] ss:$0 sm:$0xff]  ;;  %vm434_vm2 = vcmask 64512  }
  0x88   :  { %2082 = vmatpush3.bf16.msra.mxu1 %v2292_v14  ;;  %2085 = vmatprep.mubr.msk.bf16.mxu1 %vm2543_vm1, %v2542_v15  ;;  %v2294_v33 = vld [vmem:[%s3092_s6] sm:$0xff]   ;;  %v2295_v35 = vld [vmem:[%s3092_s6 + $0x8] sm:$0xff]   ;;  %s2544_s6 = smov 120   ;;  %s2546_s11 = smov 104   ;;  %vm674_vm3 = vcmask 1043456  }
  0x89   :  { %2083 = vmatprep.subr.bf16.mxu1 %v2542_v15  ;;  %2113 = vmatprep.mubr.msk.bf16.mxu0 %vm2543_vm1, %v2542_v15  ;;  %v2296_v36 = vld [vmem:[%s3094_s8] sm:$0xff]   ;;  %v2297_v37 = vld [vmem:[%s3094_s8 + $0x8] sm:$0xff]   ;;  %s2545_s8 = smov 112   ;;  %s3112_s24 = sld [smem:[#allocation21_spill]] }
  0x8a   :  { %v1960_v38 = vld [vmem:[#allocation5] ss:$0 sm:$0xff]  ;;  %v1964_v45 = vld [vmem:[#allocation7] ss:$0 sm:$0xff]  ;;  %v1968_v56 = vld [vmem:[#allocation8] ss:$0 sm:$0xff] }
  0x8c   :  { %v2732_v0 = vld [vmem:[%s3110_s9] sm:$0xff]  ;;  %v143_v1 = vld [vmem:[%s3110_s9 + $0x8] sm:$0xff]  ;;  %2084 = vmatpush3.bf16.msra.mxu1 %v2293_v16 }
  0x8d   :  { %v149_v2 = vsel %vm148_vm0, %v2732_v0, 0.0  ;;  %v152_v3 = vsel %vm148_vm0, %v143_v1, 0.0  ;;  %2089 = vmatprep.subr.bf16.mxu1 %v2542_v15  ;;  %v1958_v25 = vld [vmem:[%s3111_s23] ss:$0 sm:$0xff] }
  0x8e   :  { %150 = vadd.xlane.f32.xlu0 %v149_v2 }
  0x92   :  { %153 = vadd.xlane.f32.xlu0 %v152_v3 }
 0x11b   :  { %v151_v4 = vpop.xlane.xlu0 %150 }
 0x11c   :  { %v156_v5 = vmul.f32 0.03125, %v151_v4 }
 0x11e   :  { %v158_v6 = vsub.f32 %v2732_v0, %v156_v5 }
 0x11f   :  { %v154_v7 = vpop.xlane.xlu0 %153 }
 0x120   :  { %v157_v8 = vmul.f32 0.03125, %v154_v7  ;;  %v160_v9 = vmul.f32 %v158_v6, %v158_v6 }
 0x122   :  { %v159_v10 = vsub.f32 %v143_v1, %v157_v8  ;;  %v162_v11 = vsel %vm148_vm0, %v160_v9, 0.0 }
 0x123   :  { %163 = vadd.xlane.f32.xlu1 %v162_v11 }
 0x124   :  { %v161_v12 = vmul.f32 %v159_v10, %v159_v10 }
 0x126   :  { %v165_v13 = vsel %vm148_vm0, %v161_v12, 0.0 }
 0x127   :  { %166 = vadd.xlane.f32.xlu1 %v165_v13 }
 0x1b0   :  { %v164_v17 = vpop.xlane.xlu1 %163 }
 0x1b1   :  { %v168_v18 = vmul.f32 0.03125, %v164_v17  ;;  %v144_v17 = vld [vmem:[%s3112_s24] sm:$0xff] }
 0x1b3   :  { %v170_v19 = vadd.f32 1e-05, %v168_v18 }
 0x1b4   :  { %v167_v20 = vpop.xlane.xlu1 %166 }
 0x1b5   :  { %2308 = vrsqrt.f32 %v170_v19  ;;  %v169_v21 = vmul.f32 0.03125, %v167_v20 }
 0x1b7   :  { %v171_v22 = vadd.f32 1e-05, %v169_v21 }
 0x1b9   :  { %2310 = vrsqrt.f32 %v171_v22 }
 0x1bf   :  { %v2309_v23 = vpop.eup %2308 }
 0x1c0   :  { %v174_v24 = vmul.f32 %v2309_v23, %v158_v6 }
 0x1c2   :  { %v182_v28 = vmul.f32 %v1958_v25, %v174_v24 }
 0x1c3   :  { %v2311_v26 = vpop.eup %2310 }
 0x1c4   :  { %v175_v27 = vmul.f32 %v2311_v26, %v159_v10  ;;  %v190_v31 = vadd.f32 %v1959_v29, %v182_v28 }
 0x1c6   :  { %v183_v30 = vmul.f32 %v1958_v25, %v175_v27 }
 0x1c8   :  { %v191_v32 = vadd.f32 %v1959_v29, %v183_v30 }
 0x1ca   :  { %v192_v34 = vpack.c.bf16 %v191_v32, %v190_v31 }
 0x1cc   :  { %2086 = vmatmul.mubr.msk.bf16.vlgmr.msra.gmra.mrb[0].mxu1 %vm148_vm0, %v192_v34 }
 0x1cd   :  { %2090 = vmatpush3.bf16.msra.mxu1 %v2294_v33  ;;  %2093 = vmatprep.mubr.msk.bf16.mxu1 %vm2543_vm1, %v2542_v15 }
 0x1ce   :  { %2091 = vmatprep.subr.bf16.mxu1 %v2542_v15 }
 0x1d1   :  { %2092 = vmatpush3.bf16.msra.mxu1 %v2295_v35 }
 0x1d2   :  { %2097 = vmatprep.subr.bf16.mxu1 %v2542_v15 }
 0x1d4   :  { %2094 = vmatmul.mubr.msk.bf16.vlgmr.msra.gmra.mrb[4].mxu1 %vm148_vm0, %v192_v34 }
 0x1d5   :  { %2098 = vmatpush3.bf16.msra.mxu1 %v2296_v36  ;;  %2101 = vmatprep.mubr.msk.bf16.mxu1 %vm2543_vm1, %v2542_v15 }
 0x1d6   :  { %2099 = vmatprep.subr.bf16.mxu1 %v2542_v15 }
 0x1d9   :  { %2100 = vmatpush3.bf16.msra.mxu1 %v2297_v37 }
 0x1da   :  { %2105 = vmatprep.subr.bf16.mxu1 %v2542_v15 }
 0x1dc   :  { %2102 = vmatmul.mubr.msk.bf16.vlgmr.msra.gmra.mrb[8].mxu1 %vm148_vm0, %v192_v34 }
 0x1dd   :  { %2107 = vmatprep.mubr.msk.bf16.mxu1 %vm2543_vm1, %v2542_v15 }
 0x29f   :  { %v253_v39 = vpop.f32.mrb[0].mxu1 }
 0x2a0   :  { %v254_v40 = vadd.f32 %v1960_v38, %v253_v39  ;;  %v2087_v41 = vpop.f32.mrb[1].mxu1 }
 0x2a1   :  { %v256_v42 = vpop.f32.mrb[2].mxu1 }
 0x2a2   :  { %v2785_v43 = vadd.f32 %v1960_v38, %v256_v42  ;;  %393 = vrot.lane.b32.xlu1 %v254_v40, %s2544_s6  ;;  %v2088_v44 = vpop.f32.mrb[3].mxu1  ;;  %v402_v58 = vpack.c.bf16 %v254_v40, %v254_v40 }
 0x2a7   :  { %v317_v46 = vpop.f32.mrb[4].mxu1 }
 0x2a8   :  { %v318_v47 = vadd.f32 %v1964_v45, %v317_v46  ;;  %v2095_v48 = vpop.f32.mrb[5].mxu1 }
 0x2a9   :  { %v320_v49 = vpop.f32.mrb[6].mxu1 }
 0x2aa   :  { %v2788_v50 = vadd.f32 %v1964_v45, %v320_v49  ;;  %410 = vrot.lane.b32.xlu1 %v318_v47, %s2545_s8  ;;  %407 = vrot.lane.b32.xlu0 %v318_v47, %s2544_s6  ;;  %v2096_v51 = vpop.f32.mrb[7].mxu1  ;;  %v416_v52 = vpack.c.bf16 %v318_v47, %v318_v47 }
 0x2ac   :  { %v439_v53 = vsel %vm434_vm2, %v416_v52, 0 }
 0x2ad   :  { %2106 = vmatpush3.bf16.xpose.msra.mxu1 %v439_v53 }
 0x2ae   :  { %413 = vrot.lane.b32.xlu1 %v318_v47, %s2546_s11  ;;  %396 = vrot.lane.b32.xlu0 %v254_v40, %s2545_s8 }
 0x2af   :  { %v381_v54 = vpop.f32.mrb[8].mxu1  ;;  %2117 = vmatprep.subr.bf16.mxu1 %v2542_v15 }
 0x2b0   :  { %v2103_v55 = vpop.f32.mrb[9].mxu1  ;;  %v2802_v3 = vadd.f32 %v1968_v56, %v381_v54 }
 0x2b1   :  { %v384_v57 = vpop.f32.mrb[10].mxu1 }
 0x2b2   :  { %v2796_v59 = vadd.f32 %v1968_v56, %v384_v57  ;;  %399 = vrot.lane.b32.xlu1 %v254_v40, %s2546_s11  ;;  %v2104_v60 = vpop.f32.mrb[11].mxu1  ;;  %v430_v9 = vpack.c.bf16 %v2802_v3, %v2802_v3 }
 0x2b4   :  { %2108 = vmatmul.mubr.msk.bf16.vlgmr.msra.gmra.mrb[12].mxu1 %vm434_vm2, %v402_v58  ;;  %v676_v13 = vsel %vm674_vm3, %v430_v9, 0 }
 0x2b5   :  { %2119 = vmatprep.mubr.msk.bf16.mxu1 %vm2543_vm1, %v2542_v15 }
 0x314   :  { %v394_v61 = vpop.permute.xlu1 %393 }
 0x315   :  { %v403_v10 = vpack.c.bf16 %v394_v61, %v394_v61 }
 0x31c   :  { %v411_v62 = vpop.permute.xlu1 %410  ;;  %v408_v63 = vpop.permute.xlu0 %407 }
 0x31d   :  { %v418_v1 = vpack.c.bf16 %v411_v62, %v411_v62  ;;  %v417_v2 = vpack.c.bf16 %v408_v63, %v408_v63 }
 0x31f   :  { %v531_v4 = vsel %vm434_vm2, %v418_v1, 0  ;;  %v485_v5 = vsel %vm434_vm2, %v417_v2, 0 }
 0x320   :  { %v414_v6 = vpop.permute.xlu1 %413  ;;  %2112 = vmatpush3.bf16.xpose.msra.mxu0 %v485_v5  ;;  %2118 = vmatpush3.bf16.xpose.msra.mxu1 %v531_v4  ;;  %v397_v7 = vpop.permute.xlu0 %396 }
 0x321   :  { %2123 = vmatprep.subr.bf16.mxu0 %v2542_v15  ;;  %2129 = vmatprep.subr.bf16.mxu1 %v2542_v15  ;;  %v419_v8 = vpack.c.bf16 %v414_v6, %v414_v6  ;;  %v404_v11 = vpack.c.bf16 %v397_v7, %v397_v7 }
 0x323   :  { %v577_v12 = vsel %vm434_vm2, %v419_v8, 0 }
 0x324   :  { %v400_v14 = vpop.permute.xlu1 %399 }
 0x325   :  { %v405_v16 = vpack.c.bf16 %v400_v14, %v400_v14 }
 0x327   :  { %2114 = vmatmul.mubr.msk.bf16.vlgmr.msra.gmra.mrb[0].mxu0 %vm434_vm2, %v403_v10  ;;  %2120 = vmatmul.mubr.msk.bf16.vlgmr.msra.gmra.mrb[16].mxu1 %vm434_vm2, %v404_v11 }
 0x328   :  { %2124 = vmatpush3.bf16.xpose.msra.mxu0 %v577_v12  ;;  %2130 = vmatpush3.bf16.msra.mxu1 %v676_v13 }
 0x329   :  { %2125 = vmatprep.mubr.msk.bf16.mxu0 %vm2543_vm1, %v2542_v15  ;;  %2131 = vmatprep.mubr.msk.bf16.mxu1 %vm2543_vm1, %v2542_v15 }
 0x32a   :  { %2135 = vmatprep.subr.bf16.mxu0 %v2542_v15  ;;  %2141 = vmatprep.subr.bf16.mxu1 %v2542_v15 }
 0x32f   :  { %2126 = vmatmul.mubr.msk.bf16.vlgmr.msra.gmra.mrb[4].mxu0 %vm434_vm2, %v405_v16 }
 0x330   :  { %2137 = vmatprep.mubr.msk.bf16.mxu0 %vm2543_vm1, %v2542_v15 }
 0x387   :  { %v475_v18 = vpop.f32.mrb[12].mxu1 }
 0x388   :  { %v476_v19 = vadd.f32 %v475_v18, %v144_v17  ;;  %v2109_v20 = vpop.f32.mrb[13].mxu1 }
 0x389   :  { %v478_v21 = vpop.f32.mrb[14].mxu1 }
 0x38a   :  { %v619_v22 = vmax.f32 %v476_v19, -3.4028235e+38  ;;  %v2110_v23 = vpop.f32.mrb[15].mxu1 }
 0x38c   :  { %v623_v24 = vsel %vm434_vm2, %v619_v22, -inf }
 0x38d   :  { %624 = vmax.xlane.f32.xlu0 %v623_v24 }
 0x3fa   :  { %v521_v25 = vpop.f32.mrb[0].mxu0  ;;  %v567_v26 = vpop.f32.mrb[16].mxu1 }
 0x3fb   :  { %v522_v27 = vadd.f32 %v521_v25, %v144_v17  ;;  %v568_v28 = vadd.f32 %v567_v26, %v144_v17  ;;  %v2115_v29 = vpop.f32.mrb[1].mxu0  ;;  %v2121_v30 = vpop.f32.mrb[17].mxu1 }
 0x3fc   :  { %v524_v31 = vpop.f32.mrb[2].mxu0  ;;  %v570_v32 = vpop.f32.mrb[18].mxu1 }
 0x3fd   :  { %v620_v33 = vmax.f32 %v522_v27, -3.4028235e+38  ;;  %v621_v34 = vmax.f32 %v568_v28, -3.4028235e+38  ;;  %v2116_v35 = vpop.f32.mrb[3].mxu0  ;;  %v2122_v36 = vpop.f32.mrb[19].mxu1 }
 0x3fe   :  { %v390_v36 = vld [vmem:[%s3096_s10 + $0x8] sm:$0xf] }
 0x3ff   :  { %v626_v37 = vsel %vm434_vm2, %v620_v33, -inf  ;;  %v629_v38 = vsel %vm434_vm2, %v621_v34, -inf }
 0x400   :  { %627 = vmax.xlane.f32.xlu1 %v626_v37  ;;  %630 = vmax.xlane.f32.xlu0 %v629_v38 }
 0x402   :  { %v613_v39 = vpop.f32.mrb[4].mxu0 }
 0x403   :  { %v614_v40 = vadd.f32 %v613_v39, %v144_v17  ;;  %v2127_v41 = vpop.f32.mrb[5].mxu0 }
 0x404   :  { %v616_v42 = vpop.f32.mrb[6].mxu0 }
 0x405   :  { %v622_v44 = vmax.f32 %v614_v40, -3.4028235e+38  ;;  %v2128_v45 = vpop.f32.mrb[7].mxu0  ;;  %v2890_v40 = vsel %vm674_vm3, %v390_v36, 0 }
 0x407   :  { %v632_v46 = vsel %vm434_vm2, %v622_v44, -inf }
 0x408   :  { %633 = vmax.xlane.f32.xlu0 %v632_v46 }
 0x41a   :  { %v625_v47 = vpop.xlane.xlu0 %624 }
 0x41b   :  { %v635_v48 = vsub.f32 %v619_v22, %v625_v47  ;;  %v388_v22 = vld [vmem:[%s3096_s10] sm:$0xf]  ;;  %v1075_v47 = vpack.c.bf16 %v2788_v50, %v2788_v50 }
 0x41c   :  { %v2863_v26 = vsel %vm674_vm3, %v388_v22, 0 }
 0x41d   :  { %v639_v49 = vmul.f32 1.442695, %v635_v48 }
 0x41f   :  { %2312 = vpow2.f32 %v639_v49 }
 0x429   :  { %v2313_v51 = vpop.eup %2312 }
 0x42a   :  { %v647_v52 = vsel %vm434_vm2, %v2313_v51, 0.0 }
 0x42b   :  { %648 = vadd.xlane.f32.xlu0 %v647_v52 }
 0x48d   :  { %v628_v53 = vpop.xlane.xlu1 %627  ;;  %v631_v54 = vpop.xlane.xlu0 %630 }
 0x48e   :  { %v636_v55 = vsub.f32 %v620_v33, %v628_v53  ;;  %v637_v56 = vsub.f32 %v621_v34, %v631_v54  ;;  %v389_v34 = vld [vmem:[%s3096_s10 + $0x4] sm:$0xf] }
 0x48f   :  { %v2882_v35 = vsel %vm674_vm3, %v389_v34, 0 }
 0x490   :  { %v641_v57 = vmul.f32 1.442695, %v636_v55  ;;  %v643_v58 = vmul.f32 1.442695, %v637_v56 }
 0x492   :  { %2314 = vpow2.f32 %v641_v57 }
 0x493   :  { %2316 = vpow2.f32 %v643_v58 }
 0x495   :  { %v634_v1 = vpop.xlane.xlu0 %633 }
 0x496   :  { %v638_v4 = vsub.f32 %v622_v44, %v634_v1  ;;  %v391_v44 = vld [vmem:[%s3096_s10 + $0xc] sm:$0xf] }
 0x497   :  { %v2903_v52 = vsel %vm674_vm3, %v391_v44, 0 }
 0x498   :  { %v645_v5 = vmul.f32 1.442695, %v638_v4  ;;  %v1089_v4 = vpack.c.bf16 %v2796_v59, %v2796_v59 }
 0x49c   :  { %v2315_v60 = vpop.eup %2314 }
 0x49d   :  { %v2317_v61 = vpop.eup %2316  ;;  %v650_v62 = vsel %vm434_vm2, %v2315_v60, 0.0 }
 0x49e   :  { %651 = vadd.xlane.f32.xlu1 %v650_v62  ;;  %v653_v63 = vsel %vm434_vm2, %v2317_v61, 0.0 }
 0x49f   :  { %654 = vadd.xlane.f32.xlu0 %v653_v63  ;;  %v1061_v63 = vpack.c.bf16 %v2785_v43, %v2785_v43 }
 0x4af   :  { %424 = vrot.lane.b32.xlu1 %v2802_v3, %s2545_s8 }
 0x4b5   :  { %421 = vrot.lane.b32.xlu0 %v2802_v3, %s2544_s6 }
 0x4b8   :  { %v649_v2 = vpop.xlane.xlu0 %648 }
 0x4b9   :  { %1069 = vrot.lane.b32.xlu0 %v2788_v50, %s2545_s8  ;;  %2318 = vrcp.f32 %v649_v2 }
 0x4ba   :  { %2320 = vpow2.f32 %v645_v5 }
 0x4bd   :  { %1072 = vrot.lane.b32.xlu0 %v2788_v50, %s2546_s11 }
 0x4c1   :  { %1058 = vrot.lane.b32.xlu0 %v2785_v43, %s2546_s11 }
 0x4c3   :  { %v2319_v6 = vpop.eup %2318 }
 0x4c4   :  { %v660_v7 = vmul.f32 %v2319_v6, %v2313_v51  ;;  %v2321_v9 = vpop.eup %2320  ;;  %v1333_v6 = vsel %vm674_vm3, %v1089_v4, 0 }
 0x4c5   :  { %v656_v10 = vsel %vm434_vm2, %v2321_v9, 0.0 }
 0x4c6   :  { %v667_v8 = vpack.c.bf16 %v660_v7, %v660_v7 }
 0x4c8   :  { %2132 = vmatmul.mubr.msk.bf16.vlgmr.msra.gmra.mrb[20].mxu1 %vm434_vm2, %v667_v8 }
 0x4c9   :  { %2143 = vmatprep.mubr.msk.bf16.mxu1 %vm2543_vm1, %v2542_v15 }
 0x4d3   :  { %657 = vadd.xlane.f32.xlu1 %v656_v10 }
 0x4e4   :  { %427 = vrot.lane.b32.xlu1 %v2802_v3, %s2546_s11 }
 0x4e8   :  { %1066 = vrot.lane.b32.xlu1 %v2788_v50, %s2544_s6 }
 0x4ec   :  { %1052 = vrot.lane.b32.xlu1 %v2785_v43, %s2544_s6 }
 0x4f0   :  { %1055 = vrot.lane.b32.xlu1 %v2785_v43, %s2545_s8 }
 0x52b   :  { %v652_v11 = vpop.xlane.xlu1 %651 }
 0x52c   :  { %2322 = vrcp.f32 %v652_v11  ;;  %v655_v12 = vpop.xlane.xlu0 %654 }
 0x52d   :  { %2324 = vrcp.f32 %v655_v12 }
 0x52f   :  { %v425_v13 = vpop.permute.xlu1 %424 }
 0x530   :  { %v432_v14 = vpack.c.bf16 %v425_v13, %v425_v13  ;;  %v422_v16 = vpop.permute.xlu0 %421 }
 0x531   :  { %v431_v17 = vpack.c.bf16 %v422_v16, %v422_v16 }
 0x532   :  { %v768_v18 = vsel %vm674_vm3, %v432_v14, 0 }
 0x533   :  { %v722_v3 = vsel %vm674_vm3, %v431_v17, 0  ;;  %2142 = vmatpush3.bf16.msra.mxu1 %v768_v18 }
 0x534   :  { %2136 = vmatpush3.bf16.msra.mxu0 %v722_v3  ;;  %2153 = vmatprep.subr.bf16.mxu1 %v2542_v15  ;;  %v1070_v50 = vpop.permute.xlu0 %1069 }
 0x535   :  { %2147 = vmatprep.subr.bf16.mxu0 %v2542_v15 }
 0x536   :  { %v2323_v19 = vpop.eup %2322 }
 0x537   :  { %v2325_v20 = vpop.eup %2324  ;;  %v662_v21 = vmul.f32 %v2323_v19, %v2315_v60  ;;  %v1097_v60 = vsel %vm434_vm2, %v1075_v47, 0 }
 0x538   :  { %v664_v23 = vmul.f32 %v2325_v20, %v2317_v61  ;;  %v1077_v61 = vpack.c.bf16 %v1070_v50, %v1070_v50  ;;  %v1073_v13 = vpop.permute.xlu0 %1072 }
 0x539   :  { %v668_v24 = vpack.c.bf16 %v662_v21, %v662_v21  ;;  %v1078_v14 = vpack.c.bf16 %v1073_v13, %v1073_v13 }
 0x53a   :  { %v669_v25 = vpack.c.bf16 %v664_v23, %v664_v23  ;;  %v1189_v1 = vsel %vm434_vm2, %v1077_v61, 0 }
 0x53b   :  { %2138 = vmatmul.mubr.msk.bf16.vlgmr.msra.gmra.mrb[8].mxu0 %vm434_vm2, %v668_v24  ;;  %v1235_v17 = vsel %vm434_vm2, %v1078_v14, 0 }
 0x53c   :  { %2144 = vmatmul.mubr.msk.bf16.vlgmr.msra.gmra.mrb[24].mxu1 %vm434_vm2, %v669_v25  ;;  %2149 = vmatprep.mubr.msk.bf16.mxu0 %vm2543_vm1, %v2542_v15  ;;  %v1059_v18 = vpop.permute.xlu0 %1058 }
 0x53d   :  { %2154 = vmatpush3.bf16.msra.mxu1 %v2863_v26  ;;  %2155 = vmatprep.mubr.msk.bf16.mxu1 %vm2543_vm1, %v2542_v15  ;;  %v1064_v3 = vpack.c.bf16 %v1059_v18, %v1059_v18 }
 0x53e   :  { %2165 = vmatprep.subr.bf16.mxu1 %v2542_v15 }
 0x560   :  { %v658_v27 = vpop.xlane.xlu1 %657 }
 0x561   :  { %2326 = vrcp.f32 %v658_v27 }
 0x564   :  { %v428_v28 = vpop.permute.xlu1 %427 }
 0x565   :  { %v433_v29 = vpack.c.bf16 %v428_v28, %v428_v28 }
 0x567   :  { %v814_v30 = vsel %vm674_vm3, %v433_v29, 0 }
 0x568   :  { %2148 = vmatpush3.bf16.msra.mxu0 %v814_v30  ;;  %v1067_v45 = vpop.permute.xlu1 %1066 }
 0x569   :  { %2159 = vmatprep.subr.bf16.mxu0 %v2542_v15  ;;  %v1076_v43 = vpack.c.bf16 %v1067_v45, %v1067_v45 }
 0x56b   :  { %v2327_v31 = vpop.eup %2326  ;;  %v1143_v11 = vsel %vm434_vm2, %v1076_v43, 0 }
 0x56c   :  { %v666_v32 = vmul.f32 %v2327_v31, %v2321_v9  ;;  %v1053_v62 = vpop.permute.xlu1 %1052 }
 0x56d   :  { %v1062_v16 = vpack.c.bf16 %v1053_v62, %v1053_v62 }
 0x56e   :  { %v670_v33 = vpack.c.bf16 %v666_v32, %v666_v32 }
 0x570   :  { %2150 = vmatmul.mubr.msk.bf16.vlgmr.msra.gmra.mrb[12].mxu0 %vm434_vm2, %v670_v33  ;;  %v1056_v2 = vpop.permute.xlu1 %1055 }
 0x571   :  { %2161 = vmatprep.mubr.msk.bf16.mxu0 %vm2543_vm1, %v2542_v15  ;;  %2160 = vmatpush3.bf16.msra.mxu0 %v2882_v35  ;;  %v1063_v5 = vpack.c.bf16 %v1056_v2, %v1056_v2 }
 0x572   :  { %2171 = vmatprep.subr.bf16.mxu0 %v2542_v15 }
 0x59b   :  { %v712_v37 = vpop.f32.mrb[20].mxu1 }
 0x59c   :  { %v856_v38 = vpack.c.bf16 %v712_v37, %v712_v37  ;;  %v2133_v39 = vpop.f32.mrb[21].mxu1 }
 0x59d   :  { %v715_v41 = vpop.f32.mrb[22].mxu1 }
 0x59e   :  { %v2134_v42 = vpop.f32.mrb[23].mxu1  ;;  %2156 = vmatmul.mubr.msk.bf16.vlgmr.msra.gmra.mrb[28].mxu1 %vm434_vm2, %v856_v38  ;;  %v145_v38 = vld [vmem:[%s3112_s24 + $0x8] sm:$0xff] }
 0x59f   :  { %2166 = vmatpush3.bf16.msra.mxu1 %v2890_v40  ;;  %2167 = vmatprep.mubr.msk.bf16.mxu1 %vm2543_vm1, %v2542_v15 }
 0x5a0   :  { %2177 = vmatprep.subr.bf16.mxu1 %v2542_v15 }
 0x60e   :  { %v758_v46 = vpop.f32.mrb[8].mxu0 }
 0x60f   :  { %v857_v48 = vpack.c.bf16 %v758_v46, %v758_v46  ;;  %v804_v49 = vpop.f32.mrb[24].mxu1  ;;  %v2139_v51 = vpop.f32.mrb[9].mxu0 }
 0x610   :  { %v858_v53 = vpack.c.bf16 %v804_v49, %v804_v49  ;;  %v2145_v54 = vpop.f32.mrb[25].mxu1  ;;  %v761_v55 = vpop.f32.mrb[10].mxu0 }
 0x611   :  { %v807_v56 = vpop.f32.mrb[26].mxu1  ;;  %v2140_v57 = vpop.f32.mrb[11].mxu0  ;;  %2162 = vmatmul.mubr.msk.bf16.vlgmr.msra.gmra.mrb[16].mxu0 %vm434_vm2, %v857_v48 }
 0x612   :  { %v2146_v58 = vpop.f32.mrb[27].mxu1  ;;  %2168 = vmatmul.mubr.msk.bf16.vlgmr.msra.gmra.mrb[32].mxu1 %vm434_vm2, %v858_v53  ;;  %2172 = vmatpush3.bf16.msra.mxu0 %v2903_v52 }
 0x613   :  { %2178 = vmatpush3.bf16.xpose.msra.mxu1 %v1097_v60  ;;  %2179 = vmatprep.mubr.msk.bf16.mxu1 %vm2543_vm1, %v2542_v15 }
 0x614   :  { %2189 = vmatprep.subr.bf16.mxu1 %v2542_v15  ;;  %2173 = vmatprep.mubr.msk.bf16.mxu0 %vm2543_vm1, %v2542_v15 }
 0x615   :  { %2183 = vmatprep.subr.bf16.mxu0 %v2542_v15 }
 0x61a   :  { %2180 = vmatmul.mubr.msk.bf16.vlgmr.msra.gmra.mrb[36].mxu1 %vm434_vm2, %v1061_v63 }
 0x61b   :  { %2190 = vmatpush3.bf16.xpose.msra.mxu1 %v1189_v1  ;;  %2191 = vmatprep.mubr.msk.bf16.mxu1 %vm2543_vm1, %v2542_v15 }
 0x61c   :  { %2201 = vmatprep.subr.bf16.mxu1 %v2542_v15 }
 0x622   :  { %2192 = vmatmul.mubr.msk.bf16.vlgmr.msra.gmra.mrb[40].mxu1 %vm434_vm2, %v1063_v5 }
 0x623   :  { %2202 = vmatpush3.bf16.msra.mxu1 %v1333_v6  ;;  %2203 = vmatprep.mubr.msk.bf16.mxu1 %vm2543_vm1, %v2542_v15 }
 0x624   :  { %2213 = vmatprep.subr.bf16.mxu1 %v2542_v15 }
 0x643   :  { %v850_v7 = vpop.f32.mrb[12].mxu0 }
 0x644   :  { %v859_v8 = vpack.c.bf16 %v850_v7, %v850_v7  ;;  %v2151_v9 = vpop.f32.mrb[13].mxu0 }
 0x645   :  { %v853_v10 = vpop.f32.mrb[14].mxu0 }
 0x646   :  { %v2152_v12 = vpop.f32.mrb[15].mxu0  ;;  %2174 = vmatmul.mubr.msk.bf16.vlgmr.msra.gmra.mrb[20].mxu0 %vm434_vm2, %v859_v8 }
 0x647   :  { %2184 = vmatpush3.bf16.xpose.msra.mxu0 %v1143_v11  ;;  %2185 = vmatprep.mubr.msk.bf16.mxu0 %vm2543_vm1, %v2542_v15 }
 0x648   :  { %2195 = vmatprep.subr.bf16.mxu0 %v2542_v15 }
 0x64e   :  { %2186 = vmatmul.mubr.msk.bf16.vlgmr.msra.gmra.mrb[24].mxu0 %vm434_vm2, %v1062_v16 }
 0x64f   :  { %2196 = vmatpush3.bf16.xpose.msra.mxu0 %v1235_v17  ;;  %2197 = vmatprep.mubr.msk.bf16.mxu0 %vm2543_vm1, %v2542_v15 }
 0x650   :  { %2207 = vmatprep.subr.bf16.mxu0 %v2542_v15 }
 0x656   :  { %2198 = vmatmul.mubr.msk.bf16.vlgmr.msra.gmra.mrb[28].mxu0 %vm434_vm2, %v1064_v3 }
 0x657   :  { %2209 = vmatprep.mubr.msk.bf16.mxu0 %vm2543_vm1, %v2542_v15 }
 0x671   :  { %v900_v19 = vpop.f32.mrb[28].mxu1 }
 0x672   :  { %v2157_v20 = vpop.f32.mrb[29].mxu1  ;;  %v1044_v24 = vsel %vm148_vm0, %v900_v19, 0.0 }
 0x673   :  { %v903_v21 = vpop.f32.mrb[30].mxu1 }
 0x674   :  { %v2158_v22 = vpop.f32.mrb[31].mxu1 }
 0x6e4   :  { %v946_v23 = vpop.f32.mrb[16].mxu0 }
 0x6e5   :  { %v1045_v25 = vsel %vm148_vm0, %v946_v23, 0.0  ;;  %v992_v27 = vpop.f32.mrb[32].mxu1  ;;  %v2163_v28 = vpop.f32.mrb[17].mxu0 }
 0x6e6   :  { %v1046_v29 = vadd.f32 %v1045_v25, %v1044_v24  ;;  %v2169_v30 = vpop.f32.mrb[33].mxu1  ;;  %v949_v31 = vpop.f32.mrb[18].mxu0  ;;  %v1047_v32 = vsel %vm148_vm0, %v992_v27, 0.0 }
 0x6e7   :  { %v995_v33 = vpop.f32.mrb[34].mxu1  ;;  %v2164_v34 = vpop.f32.mrb[19].mxu0 }
 0x6e8   :  { %v1048_v36 = vadd.f32 %v1047_v32, %v1046_v29  ;;  %v2170_v37 = vpop.f32.mrb[35].mxu1 }
 0x6ed   :  { %v1133_v39 = vpop.f32.mrb[36].mxu1 }
 0x6ee   :  { %v1134_v41 = vadd.f32 %v1133_v39, %v145_v38  ;;  %v2181_v42 = vpop.f32.mrb[37].mxu1  ;;  %v2965_v39 = vld [vmem:[#allocation10] ss:$0 sm:$0xff] }
 0x6ef   :  { %v1136_v44 = vpop.f32.mrb[38].mxu1 }
 0x6f0   :  { %v1277_v45 = vmax.f32 %v1134_v41, -3.4028235e+38  ;;  %v2182_v46 = vpop.f32.mrb[39].mxu1 }
 0x6f2   :  { %v1281_v47 = vsel %vm434_vm2, %v1277_v45, -inf }
 0x6f3   :  { %1282 = vmax.xlane.f32.xlu1 %v1281_v47 }
 0x6f5   :  { %v1225_v48 = vpop.f32.mrb[40].mxu1 }
 0x6f6   :  { %v2193_v49 = vpop.f32.mrb[41].mxu1  ;;  %v1226_v61 = vadd.f32 %v1225_v48, %v145_v38 }
 0x6f7   :  { %v1228_v51 = vpop.f32.mrb[42].mxu1 }
 0x6f8   :  { %v2194_v53 = vpop.f32.mrb[43].mxu1  ;;  %v1279_v5 = vmax.f32 %v1226_v61, -3.4028235e+38 }
 0x6fa   :  { %v1287_v9 = vsel %vm434_vm2, %v1279_v5, -inf }
 0x704   :  { %1080 = vrot.lane.b32.xlu1 %v2796_v59, %s2544_s6 }
 0x719   :  { %v1038_v54 = vpop.f32.mrb[20].mxu0 }
 0x71a   :  { %v1049_v55 = vsel %vm148_vm0, %v1038_v54, 0.0  ;;  %v2175_v56 = vpop.f32.mrb[21].mxu0 }
 0x71b   :  { %v1050_v57 = vadd.f32 %v1049_v55, %v1048_v36  ;;  %v1041_v58 = vpop.f32.mrb[22].mxu0 }
 0x71c   :  { %v2176_v60 = vpop.f32.mrb[23].mxu0 }
 0x71d   :  { %v1703_v41 = vadd.f32 %v2965_v39, %v1050_v57 }
 0x71f   :  { %v2969_v42 = vadd.f32 %v1703_v41, %v2732_v0 }
 0x721   :  { %v1179_v50 = vpop.f32.mrb[24].mxu0  ;;  %v1709_v44 = vsel %vm148_vm0, %v2969_v42, 0.0 }
 0x722   :  { %v1180_v62 = vadd.f32 %v1179_v50, %v145_v38  ;;  %v2187_v63 = vpop.f32.mrb[25].mxu0 }
 0x723   :  { %v1182_v1 = vpop.f32.mrb[26].mxu0 }
 0x724   :  { %v1278_v2 = vmax.f32 %v1180_v62, -3.4028235e+38  ;;  %v2188_v4 = vpop.f32.mrb[27].mxu0 }
 0x726   :  { %v1284_v6 = vsel %vm434_vm2, %v1278_v2, -inf }
 0x727   :  { %1285 = vmax.xlane.f32.xlu0 %v1284_v6 }
 0x729   :  { %v1271_v43 = vpop.f32.mrb[28].mxu0 }
 0x72a   :  { %v1272_v7 = vadd.f32 %v1271_v43, %v145_v38  ;;  %v2199_v8 = vpop.f32.mrb[29].mxu0 }
 0x72b   :  { %v1274_v10 = vpop.f32.mrb[30].mxu0  ;;  %1288 = vmax.xlane.f32.xlu0 %v1287_v9 }
 0x72c   :  { %v1280_v11 = vmax.f32 %v1272_v7, -3.4028235e+38  ;;  %v2200_v12 = vpop.f32.mrb[31].mxu0 }
 0x72e   :  { %v1290_v13 = vsel %vm434_vm2, %v1280_v11, -inf }
 0x72f   :  { %1291 = vmax.xlane.f32.xlu0 %v1290_v13 }
 0x780   :  { %v1283_v14 = vpop.xlane.xlu1 %1282 }
 0x781   :  { %v1293_v16 = vsub.f32 %v1277_v45, %v1283_v14 }
 0x783   :  { %v1297_v17 = vmul.f32 1.442695, %v1293_v16 }
 0x784   :  { %v1081_v18 = vpop.permute.xlu1 %1080 }
 0x785   :  { %2328 = vpow2.f32 %v1297_v17  ;;  %v1090_v3 = vpack.c.bf16 %v1081_v18, %v1081_v18 }
 0x787   :  { %v1379_v19 = vsel %vm674_vm3, %v1090_v3, 0 }
 0x788   :  { %2208 = vmatpush3.bf16.msra.mxu0 %v1379_v19 }
 0x789   :  { %2219 = vmatprep.subr.bf16.mxu0 %v2542_v15 }
 0x78f   :  { %v2329_v20 = vpop.eup %2328 }
 0x790   :  { %v1305_v21 = vsel %vm434_vm2, %v2329_v20, 0.0 }
 0x791   :  { %1306 = vadd.xlane.f32.xlu1 %v1305_v21 }
 0x7b4   :  { %v1286_v22 = vpop.xlane.xlu0 %1285 }
 0x7b5   :  { %v1294_v23 = vsub.f32 %v1278_v2, %v1286_v22 }
 0x7b7   :  { %v1299_v24 = vmul.f32 1.442695, %v1294_v23 }
 0x7b8   :  { %v1289_v25 = vpop.xlane.xlu0 %1288 }
 0x7b9   :  { %2330 = vpow2.f32 %v1299_v24  ;;  %v1295_v27 = vsub.f32 %v1279_v5, %v1289_v25 }
 0x7bb   :  { %v1301_v28 = vmul.f32 1.442695, %v1295_v27 }
 0x7bc   :  { %v1292_v29 = vpop.xlane.xlu0 %1291 }
 0x7bd   :  { %2332 = vpow2.f32 %v1301_v28  ;;  %v1296_v30 = vsub.f32 %v1280_v11, %v1292_v29 }
 0x7bf   :  { %v1303_v31 = vmul.f32 1.442695, %v1296_v30 }
 0x7c1   :  { %2334 = vpow2.f32 %v1303_v31 }
 0x7c3   :  { %v2331_v32 = vpop.eup %2330 }
 0x7c4   :  { %v1308_v33 = vsel %vm434_vm2, %v2331_v32, 0.0 }
 0x7c5   :  { %1309 = vadd.xlane.f32.xlu0 %v1308_v33 }
 0x7c7   :  { %v2333_v34 = vpop.eup %2332 }
 0x7c8   :  { %v1311_v36 = vsel %vm434_vm2, %v2333_v34, 0.0 }
 0x7c9   :  { %1312 = vadd.xlane.f32.xlu1 %v1311_v36 }
 0x7cb   :  { %v2335_v37 = vpop.eup %2334 }
 0x7cc   :  { %v1314_v38 = vsel %vm434_vm2, %v2335_v37, 0.0 }
 0x7cd   :  { %1315 = vadd.xlane.f32.xlu0 %v1314_v38 }
 0x7da   :  { %1086 = vrot.lane.b32.xlu1 %v2796_v59, %s2546_s11 }
 0x7e3   :  { %1083 = vrot.lane.b32.xlu0 %v2796_v59, %s2545_s8 }
 0x7fe   :  { %1710 = vadd.xlane.f32.xlu1 %v1709_v44 }
 0x81e   :  { %v1307_v45 = vpop.xlane.xlu1 %1306 }
 0x81f   :  { %2336 = vrcp.f32 %v1307_v45 }
 0x829   :  { %v2337_v46 = vpop.eup %2336 }
 0x82a   :  { %v1318_v47 = vmul.f32 %v2337_v46, %v2329_v20 }
 0x82c   :  { %v1325_v48 = vpack.c.bf16 %v1318_v47, %v1318_v47 }
 0x82e   :  { %2204 = vmatmul.mubr.msk.bf16.vlgmr.msra.gmra.mrb[44].mxu1 %vm434_vm2, %v1325_v48 }
 0x82f   :  { %2215 = vmatprep.mubr.msk.bf16.mxu1 %vm2543_vm1, %v2542_v15 }
 0x852   :  { %v1310_v59 = vpop.xlane.xlu0 %1309 }
 0x853   :  { %2338 = vrcp.f32 %v1310_v59 }
 0x856   :  { %v1313_v49 = vpop.xlane.xlu1 %1312 }
 0x857   :  { %2340 = vrcp.f32 %v1313_v49 }
 0x85a   :  { %v1316_v0 = vpop.xlane.xlu0 %1315  ;;  %v1087_v51 = vpop.permute.xlu1 %1086 }
 0x85b   :  { %2342 = vrcp.f32 %v1316_v0  ;;  %v1092_v55 = vpack.c.bf16 %v1087_v51, %v1087_v51 }
 0x85d   :  { %v2339_v53 = vpop.eup %2338  ;;  %v1471_v62 = vsel %vm674_vm3, %v1092_v55, 0 }
 0x85e   :  { %v1320_v54 = vmul.f32 %v2339_v53, %v2331_v32  ;;  %v1084_v56 = vpop.permute.xlu0 %1083  ;;  %v2348_v53 = vld [vmem:[%s3110_s9 + $0x8] sm:$0xff] }
 0x85f   :  { %v1091_v57 = vpack.c.bf16 %v1084_v56, %v1084_v56 }
 0x860   :  { %v1326_v58 = vpack.c.bf16 %v1320_v54, %v1320_v54 }
 0x861   :  { %v2341_v60 = vpop.eup %2340  ;;  %v1425_v50 = vsel %vm674_vm3, %v1091_v57, 0 }
 0x862   :  { %v1322_v61 = vmul.f32 %v2341_v60, %v2333_v34  ;;  %2210 = vmatmul.mubr.msk.bf16.vlgmr.msra.gmra.mrb[32].mxu0 %vm434_vm2, %v1326_v58  ;;  %2214 = vmatpush3.bf16.msra.mxu1 %v1425_v50 }
 0x863   :  { %2220 = vmatpush3.bf16.msra.mxu0 %v1471_v62  ;;  %2221 = vmatprep.mubr.msk.bf16.mxu0 %vm2543_vm1, %v2542_v15  ;;  %v2298_v62 = vld [vmem:[%s3100_s14] sm:$0xff]  }
 0x864   :  { %v1327_v63 = vpack.c.bf16 %v1322_v61, %v1322_v61  ;;  %2225 = vmatprep.subr.bf16.mxu1 %v2542_v15  ;;  %2231 = vmatprep.subr.bf16.mxu0 %v2542_v15 }
 0x865   :  { %v2343_v1 = vpop.eup %2342 }
 0x866   :  { %v1324_v2 = vmul.f32 %v2343_v1, %v2335_v37  ;;  %2216 = vmatmul.mubr.msk.bf16.vlgmr.msra.gmra.mrb[48].mxu1 %vm434_vm2, %v1327_v63  ;;  %v2299_v63 = vld [vmem:[%s3100_s14 + $0x8] sm:$0xff]   ;;  %v2300_v1 = vld [vmem:[%s3102_s16] sm:$0xff]  }
 0x867   :  { %2226 = vmatpush3.bf16.msra.mxu1 %v2863_v26  ;;  %2227 = vmatprep.mubr.msk.bf16.mxu1 %vm2543_vm1, %v2542_v15 }
 0x868   :  { %v1328_v4 = vpack.c.bf16 %v1324_v2, %v1324_v2  ;;  %2237 = vmatprep.subr.bf16.mxu1 %v2542_v15  ;;  %v2301_v2 = vld [vmem:[%s3102_s16 + $0x8] sm:$0xff]  }
 0x86a   :  { %2222 = vmatmul.mubr.msk.bf16.vlgmr.msra.gmra.mrb[36].mxu0 %vm434_vm2, %v1328_v4  ;;  %v2302_v4 = vld [vmem:[%s3102_s16 + $0x10] sm:$0xff]  }
 0x86b   :  { %2232 = vmatpush3.bf16.msra.mxu0 %v2882_v35  ;;  %2233 = vmatprep.mubr.msk.bf16.mxu0 %vm2543_vm1, %v2542_v15 }
 0x86c   :  { %2243 = vmatprep.subr.bf16.mxu0 %v2542_v15 }
 0x88b   :  { %v1711_v33 = vpop.xlane.xlu1 %1710 }
 0x88c   :  { %v1715_v44 = vmul.f32 0.03125, %v1711_v33 }
 0x88e   :  { %v1717_v0 = vsub.f32 %v2969_v42, %v1715_v44 }
 0x890   :  { %v1719_v56 = vmul.f32 %v1717_v0, %v1717_v0 }
 0x892   :  { %v1721_v57 = vsel %vm148_vm0, %v1719_v56, 0.0 }
 0x901   :  { %v1369_v5 = vpop.f32.mrb[44].mxu1 }
 0x902   :  { %v1513_v6 = vpack.c.bf16 %v1369_v5, %v1369_v5  ;;  %v2205_v43 = vpop.f32.mrb[45].mxu1  ;;  %v2303_v5 = vld [vmem:[%s3102_s16 + $0x18] sm:$0xff]  }
 0x903   :  { %v1372_v7 = vpop.f32.mrb[46].mxu1  ;;  %v2305_v43 = vld [vmem:[%s3102_s16 + $0x28] sm:$0xff]  }
 0x904   :  { %v2206_v26 = vpop.f32.mrb[47].mxu1  ;;  %2228 = vmatmul.mubr.msk.bf16.vlgmr.msra.gmra.mrb[52].mxu1 %vm434_vm2, %v1513_v6  ;;  %v2304_v6 = vld [vmem:[%s3102_s16 + $0x20] sm:$0xff]  }
 0x905   :  { %2238 = vmatpush3.bf16.msra.mxu1 %v2890_v40  ;;  %2239 = vmatprep.mubr.msk.bf16.mxu1 %vm2543_vm1, %v2542_v15 }
 0x906   :  { %2249 = vmatprep.subr.bf16.mxu1 %v2542_v15 }
 0x935   :  { %v1415_v35 = vpop.f32.mrb[32].mxu0 }
 0x936   :  { %v1514_v8 = vpack.c.bf16 %v1415_v35, %v1415_v35  ;;  %v2211_v9 = vpop.f32.mrb[33].mxu0 }
 0x937   :  { %v1418_v10 = vpop.f32.mrb[34].mxu0 }
 0x938   :  { %v2212_v11 = vpop.f32.mrb[35].mxu0  ;;  %2234 = vmatmul.mubr.msk.bf16.vlgmr.msra.gmra.mrb[40].mxu0 %vm434_vm2, %v1514_v8 }
 0x939   :  { %v1461_v12 = vpop.f32.mrb[48].mxu1  ;;  %2244 = vmatpush3.bf16.msra.mxu0 %v2903_v52  ;;  %2245 = vmatprep.mubr.msk.bf16.mxu0 %vm2543_vm1, %v2542_v15 }
 0x93a   :  { %v1515_v13 = vpack.c.bf16 %v1461_v12, %v1461_v12  ;;  %v2217_v40 = vpop.f32.mrb[49].mxu1  ;;  %2257 = vmatprep.subr.bf16.mxu0 %v2542_v15 }
 0x93b   :  { %v1464_v14 = vpop.f32.mrb[50].mxu1 }
 0x93c   :  { %v2218_v16 = vpop.f32.mrb[51].mxu1  ;;  %2240 = vmatmul.mubr.msk.bf16.vlgmr.msra.gmra.mrb[56].mxu1 %vm434_vm2, %v1515_v13  ;;  %v1997_v13 = vld [vmem:[#allocation11] ss:$0 sm:$0xff] }
 0x93d   :  { %v1507_v17 = vpop.f32.mrb[36].mxu0  ;;  %2253 = vmatprep.mubr.msk.bf16.mxu1 %vm2543_vm1, %v2542_v15  ;;  %2250 = vmatpush3.bf16.msra.mxu1 %v2298_v62 }
 0x93e   :  { %v1516_v18 = vpack.c.bf16 %v1507_v17, %v1507_v17  ;;  %v2223_v3 = vpop.f32.mrb[37].mxu0  ;;  %2251 = vmatprep.subr.bf16.mxu1 %v2542_v15  ;;  %v1998_v17 = vld [vmem:[#allocation13] ss:$0 sm:$0xff] }
 0x93f   :  { %v1510_v19 = vpop.f32.mrb[38].mxu0 }
 0x940   :  { %v2224_v20 = vpop.f32.mrb[39].mxu0  ;;  %2246 = vmatmul.mubr.msk.bf16.vlgmr.msra.gmra.mrb[44].mxu0 %vm434_vm2, %v1516_v18 }
 0x941   :  { %2273 = vmatprep.mubr.msk.bf16.mxu0 %vm2543_vm1, %v2542_v15  ;;  %2252 = vmatpush3.bf16.msra.mxu1 %v2299_v63 }
 0x942   :  { %2258 = vmatpush3.bf16.msra.mxu0 %v2300_v1 }
 0x943   :  { %2259 = vmatprep.subr.bf16.mxu0 %v2542_v15 }
 0x946   :  { %2260 = vmatpush3.bf16.msra.mxu0 %v2301_v2 }
 0x947   :  { %2261 = vmatprep.subr.bf16.mxu0 %v2542_v15 }
 0x94a   :  { %2262 = vmatpush3.bf16.msra.mxu0 %v2302_v4 }
 0x94b   :  { %2263 = vmatprep.subr.bf16.mxu0 %v2542_v15 }
 0x94e   :  { %2264 = vmatpush3.bf16.msra.mxu0 %v2303_v5 }
 0x94f   :  { %2265 = vmatprep.subr.bf16.mxu0 %v2542_v15 }
 0x952   :  { %2266 = vmatpush3.bf16.msra.mxu0 %v2304_v6 }
 0x953   :  { %2267 = vmatprep.subr.bf16.mxu0 %v2542_v15 }
 0x956   :  { %2268 = vmatpush3.bf16.msra.mxu0 %v2305_v43 }
 0x957   :  { %2269 = vmatprep.subr.bf16.mxu0 %v2542_v15 }
 0x9d7   :  { %v1554_v52 = vpop.f32.mrb[52].mxu1 }
 0x9d8   :  { %v2229_v21 = vpop.f32.mrb[53].mxu1  ;;  %v1689_v25 = vsel %vm148_vm0, %v1554_v52, 0.0  ;;  %v2306_v52 = vld [vmem:[%s3102_s16 + $0x30] sm:$0xff]  }
 0x9d9   :  { %v1557_v22 = vpop.f32.mrb[54].mxu1  ;;  %2270 = vmatpush3.bf16.msra.mxu0 %v2306_v52  ;;  %v2307_v21 = vld [vmem:[%s3102_s16 + $0x38] sm:$0xff]   ;;  %s2547_s16 = smov [#allocation14]  }
 0x9da   :  { %v2230_v23 = vpop.f32.mrb[55].mxu1  ;;  %2271 = vmatprep.subr.bf16.mxu0 %v2542_v15  ;;  %v1999_v22 = vld [vmem:[%s3101_s15] ss:$0 sm:$0xff]  ;;  %s1943_s15 = sshll.u32 %s2547_s16, 4  ;;  %s1944_s15 = int_to_ptr.vmem [resolvable:$true] %s1943_s15 }
 0x9db   :  { %v2003_v15 = vld [vmem:[%s3103_s17] ss:$0 sm:$0xff]  ;;  %s2503_s28 = scalar_lea.vmem %s1944_s15, 256  ;;  %p2508_p1 = scmp.lt.s32.totalorder %s1944_s15, %s1944_s15 }
 0x9dc   :  { %p2504_p0 = scmp.ne.s32.totalorder %s1944_s15, %s2503_s28  ;;  %p2509_p2 = scmp.lt.s32.totalorder %s2503_s28, %s2503_s28 }
 0x9dd   :  { %2272 = vmatpush3.bf16.msra.mxu0 %v2307_v21 }
 0x9de   :  { %p2510_p3 = por %p2509_p2, %p2508_p1 }
 0x9e0   :  { %p2511_p4 = pnand %p2510_p3, %p2504_p0 }
 0xa0b   :  { %v1597_v24 = vpop.f32.mrb[40].mxu0 }
 0xa0c   :  { %v1690_v27 = vsel %vm148_vm0, %v1597_v24, 0.0  ;;  %v2235_v28 = vpop.f32.mrb[41].mxu0 }
 0xa0d   :  { %v1691_v29 = vadd.f32 %v1690_v27, %v1689_v25  ;;  %v1600_v30 = vpop.f32.mrb[42].mxu0 }
 0xa0e   :  { %v2236_v31 = vpop.f32.mrb[43].mxu0 }
 0xa0f   :  { %v1640_v32 = vpop.f32.mrb[56].mxu1 }
 0xa10   :  { %v1692_v34 = vsel %vm148_vm0, %v1640_v32, 0.0  ;;  %v2241_v36 = vpop.f32.mrb[57].mxu1 }
 0xa11   :  { %v1693_v37 = vadd.f32 %v1692_v34, %v1691_v29  ;;  %v1643_v38 = vpop.f32.mrb[58].mxu1 }
 0xa12   :  { %v2242_v41 = vpop.f32.mrb[59].mxu1 }
 0xa13   :  { %v1683_v45 = vpop.f32.mrb[44].mxu0 }
 0xa14   :  { %v1694_v46 = vsel %vm148_vm0, %v1683_v45, 0.0  ;;  %v2247_v47 = vpop.f32.mrb[45].mxu0 }
 0xa15   :  { %v1695_v48 = vadd.f32 %v1694_v46, %v1693_v37  ;;  %v1686_v59 = vpop.f32.mrb[46].mxu0 }
 0xa16   :  { %v2248_v49 = vpop.f32.mrb[47].mxu0 }
 0xa17   :  { %v1704_v51 = vadd.f32 %v2965_v39, %v1695_v48 }
 0xa19   :  { %v3018_v54 = vadd.f32 %v2348_v53, %v1704_v51 }
 0xa1b   :  { %v1712_v55 = vsel %vm148_vm0, %v3018_v54, 0.0 }
 0xa1c   :  { %1713 = vadd.xlane.f32.xlu0 %v1712_v55 }
 0xa20   :  { %1722 = vadd.xlane.f32.xlu0 %v1721_v57 }
 0xaa9   :  { %v1714_v58 = vpop.xlane.xlu0 %1713 }
 0xaaa   :  { %v1716_v60 = vmul.f32 0.03125, %v1714_v58 }
 0xaac   :  { %v1718_v50 = vsub.f32 %v3018_v54, %v1716_v60 }
 0xaad   :  { %v1723_v7 = vpop.xlane.xlu0 %1722 }
 0xaae   :  { %v1720_v61 = vmul.f32 %v1718_v50, %v1718_v50  ;;  %v1727_v26 = vmul.f32 0.03125, %v1723_v7 }
 0xab0   :  { %v1724_v39 = vsel %vm148_vm0, %v1720_v61, 0.0  ;;  %v1729_v35 = vadd.f32 1e-05, %v1727_v26 }
 0xab1   :  { %1725 = vadd.xlane.f32.xlu1 %v1724_v39 }
 0xab2   :  { %2344 = vrsqrt.f32 %v1729_v35 }
 0xabc   :  { %v2345_v11 = vpop.eup %2344 }
 0xabd   :  { %v1733_v12 = vmul.f32 %v2345_v11, %v1717_v0 }
 0xabf   :  { %v1741_v14 = vmul.f32 %v1997_v13, %v1733_v12 }
 0xac1   :  { %v1749_v3 = vadd.f32 %v1998_v17, %v1741_v14 }
 0xb3e   :  { %v1726_v8 = vpop.xlane.xlu1 %1725 }
 0xb3f   :  { %v1728_v9 = vmul.f32 0.03125, %v1726_v8 }
 0xb41   :  { %v1730_v10 = vadd.f32 1e-05, %v1728_v9 }
 0xb43   :  { %2346 = vrsqrt.f32 %v1730_v10 }
 0xb4d   :  { %v2347_v40 = vpop.eup %2346 }
 0xb4e   :  { %v1734_v16 = vmul.f32 %v2347_v40, %v1718_v50 }
 0xb50   :  { %v1742_v18 = vmul.f32 %v1997_v13, %v1734_v16 }
 0xb52   :  { %v1750_v19 = vadd.f32 %v1998_v17, %v1742_v18 }
 0xb54   :  { %v1751_v20 = vpack.c.bf16 %v1750_v19, %v1749_v3 }
 0xb56   :  { %2254 = vmatmul.mubr.msk.bf16.vlgmr.msra.gmra.mrb[60].mxu1 %vm148_vm0, %v1751_v20 }
 0xc29   :  { %v1812_v23 = vpop.f32.mrb[60].mxu1 }
 0xc2a   :  { %v1813_v24 = vadd.f32 %v1999_v22, %v1812_v23  ;;  %v2255_v25 = vpop.f32.mrb[61].mxu1 }
 0xc2b   :  { %v1815_v27 = vpop.f32.mrb[62].mxu1 }
 0xc2c   :  { %v1816_v28 = vadd.f32 %v1999_v22, %v1815_v27  ;;  %v2256_v29 = vpop.f32.mrb[63].mxu1  ;;  %v1819_v30 = vmax.f32 %v1813_v24, 0.0 }
 0xc2e   :  { %v1820_v31 = vmax.f32 %v1816_v28, 0.0 }
 0xc30   :  { %v1821_v32 = vpack.c.bf16 %v1820_v31, %v1819_v30 }
 0xc32   :  { %2274 = vmatmul.mubr.bf16.vlgmr.msra.gmra.mrb[48].mxu0 %v1821_v32 }
 0xd05   :  { %v1927_v33 = vpop.f32.mrb[48].mxu0 }
 0xd06   :  { %v1928_v34 = vadd.f32 %v2003_v15, %v1927_v33  ;;  %v2275_v36 = vpop.f32.mrb[49].mxu0 }
 0xd07   :  { %v1930_v37 = vpop.f32.mrb[50].mxu0 }
 0xd08   :  { %v1934_v38 = vadd.f32 %v1928_v34, %v2969_v42  ;;  %v1931_v41 = vadd.f32 %v2003_v15, %v1930_v37  ;;  %v2276_v44 = vpop.f32.mrb[51].mxu0 }
 0xd0a   :  { %1936 = vst.msk [vmem:[#allocation14] sm:$0xff] %vm148_vm0, %v1934_v38  ;;  %v1935_v45 = vadd.f32 %v1931_v41, %v3018_v54 }
 0xd0c   :  { %1937 = vst.msk [vmem:[#allocation14 + $0x8] sm:$0xff] %vm148_vm0, %v1935_v45 }
 0xd0d   :  { %2514 = shalt.err (!%p2511_p4)
}
 0xd0e   :  { %s2515_s25 = scalar_lea.hbm %s3104_s18, 256 }
 0xd0f   :  { %p2516_p5 = scmp.ne.s32.totalorder %s3104_s18, %s2515_s25  ;;  %p2519_p6 = scmp.lt.u32.totalorder %s2515_s25, %s3104_s18 }
 0xd11   :  { %p2521_p7 = pnand %p2519_p6, %p2516_p5 }
 0xd13   :  { %2524 = shalt.err (!%p2521_p7)
}
 0xd14   :  { %s2548_s29 = smov 128   ;;  %s2549_s0 = smov 8  }
 0xd15   :  { %1949 = dma.vmem_to_hbm [thread:$0]  %s1944_s15, 256, %s3104_s18, [#allocation4], %s2548_s29, %s2548_s29, %s2549_s0  }
 0xd16   :  { %2533 = dma.done.wait [#allocation4], 256  }
 0xd17   :  { %2534 = vsyncadd [#allocation4], 4294967040 }
 0xd18   :  { %1953 = vsyncpa [#allocation3], 1 }
 0xd19   :  { %1954 = vsyncpa [#allocation6], 1 }
 0xd1a   :  { %1955 = vsyncpa [#allocation9], 1 }
 0xd1b   :  { %1956 = vsyncpa [#allocation12], 1 }
 0xd1c   :  { %1957 = vsyncpa [#allocation4], 1 }

</bundles_post_ra>
